<compile_context>
chip_gen: v5e
topology: v5e:2x2
jax: 0.10.0
libtpu: 0.0.40
codegen_flags: <defaults>
</compile_context>

<pallas_src>
import functools

import jax
import jax.numpy as jnp
from jax import lax
from jax.experimental import pallas as pl
from jax.experimental.pallas import tpu as pltpu


# ------------------------------ Pallas kernel --------------------------------

def _attention_kernel(x_ref, wqkv_ref, wout_ref, bout_ref, o_ref, *,
                      heads, head_dim, scale, project_out):
    """Fused attention forward for one (bt, N, D) tile of (batch*patch) rows."""
    bt, n, d = x_ref.shape
    inner = heads * head_dim

    # Fused QKV projection: one MXU matmul producing all 3*inner columns.
    x2 = x_ref[...].reshape(bt * n, d)                                   # bf16
    qkv = jnp.dot(x2, wqkv_ref[...],
                  preferred_element_type=jnp.float32)                    # (bt*n, 3*inner) f32
    qkv = qkv.reshape(bt, n, 3 * inner)

    acc = None
    for h in range(heads):                     # static unroll; heads is small
        lo = h * head_dim
        # Fold the softmax scale into q (cheaper than scaling the NxN dots).
        qh = (qkv[:, :, lo:lo + head_dim] * scale).astype(jnp.bfloat16)
        kh = qkv[:, :, inner + lo:inner + lo + head_dim].astype(jnp.bfloat16)
        vh = qkv[:, :, 2 * inner + lo:2 * inner + lo + head_dim].astype(jnp.bfloat16)

        # dots = (q*scale) @ k^T, stable softmax over keys, then @ v.
        dots = jnp.einsum('bnd,bmd->bnm', qh, kh,
                          preferred_element_type=jnp.float32)             # (bt, n, n)
        dots = dots - jnp.max(dots, axis=-1, keepdims=True)
        p = jnp.exp(dots)                                                 # EUP
        p = p * pl.reciprocal(jnp.sum(p, axis=-1, keepdims=True), approx=True)
        oh = jnp.einsum('bnm,bmd->bnd', p.astype(jnp.bfloat16), vh,
                        preferred_element_type=jnp.float32)               # (bt, n, head_dim)

        if project_out:
            # Per-head (sublane-aligned) slice of W_out; f32 accumulate fuses
            # head-concat + output projection into the same kernel.
            contrib = jnp.dot(oh.reshape(bt * n, head_dim).astype(jnp.bfloat16),
                              wout_ref[lo:lo + head_dim, :],
                              preferred_element_type=jnp.float32)
            acc = contrib if acc is None else acc + contrib
        else:
            # project_out == False implies heads == 1 and head_dim == dim.
            acc = oh.reshape(bt * n, head_dim)

    if project_out:
        acc = acc + bout_ref[...]                                         # (1, d) bias
    o_ref[...] = acc.reshape(bt, n, d).astype(o_ref.dtype)


# ------------------------------ wrapper ---------------------------------------

def _pick_bp_tile(bp):
    """Largest divisor of bp yielding >= 2 grid steps (megacore) if possible."""
    if bp <= 1:
        return 1
    for cand in range(bp // 2, 0, -1):
        if bp % cand == 0:
            return cand
    return 1


@functools.partial(jax.jit, static_argnames=("heads", "head_dim"))
def attention_forward(x, params, *, heads, head_dim):
    """MobileViT Attention forward. x: (B, P, N, dim) float32 -> (B, P, N, dim)."""
    B, P, N, D = x.shape
    inner = heads * head_dim
    project_out = not (heads == 1 and head_dim == D)

    bp = B * P
    bt = _pick_bp_tile(bp)

    xf = x.reshape(bp, N, D).astype(jnp.bfloat16)
    wqkv = params["wqkv"].astype(jnp.bfloat16)                   # (D, 3*inner)
    if project_out:
        wout = params["wout"].astype(jnp.bfloat16)               # (inner, D)
        bout = params["bout"].reshape(1, D).astype(jnp.float32)
    else:
        wout = jnp.zeros((inner, D), jnp.bfloat16)               # unused (to_out = Identity)
        bout = jnp.zeros((1, D), jnp.float32)                    # unused

    kern = functools.partial(_attention_kernel, heads=heads, head_dim=head_dim,
                             scale=float(head_dim) ** -0.5, project_out=project_out)
    out = pl.pallas_call(
        kern,
        out_shape=jax.ShapeDtypeStruct((bp, N, D), jnp.float32),
        grid=(bp // bt,),
        in_specs=[
            pl.BlockSpec((bt, N, D), lambda i: (i, 0, 0)),
            pl.BlockSpec((D, 3 * inner), lambda i: (0, 0)),
            pl.BlockSpec((inner, D), lambda i: (0, 0)),
            pl.BlockSpec((1, D), lambda i: (0, 0)),
        ],
        out_specs=pl.BlockSpec((bt, N, D), lambda i: (i, 0, 0)),
        compiler_params=pltpu.CompilerParams(
            dimension_semantics=("parallel",)),
    )(xf, wqkv, wout, bout)
    return out.reshape(B, P, N, D)


# ------------------------ pure-JAX reference (for checking) -------------------

def attention_reference(x, params, *, heads, head_dim):
    B, P, N, D = x.shape
    inner = heads * head_dim
    hi = lax.Precision.HIGHEST
    qkv = jnp.einsum('bpnd,de->bpne', x, params["wqkv"], precision=hi)
    q, k, v = jnp.split(qkv, 3, axis=-1)
    split_heads = lambda t: t.reshape(B, P, N, heads, head_dim).transpose(0, 1, 3, 2, 4)
    q, k, v = map(split_heads, (q, k, v))
    dots = jnp.einsum('bphnd,bphmd->bphnm', q, k, precision=hi) * (head_dim ** -0.5)
    attn = jax.nn.softmax(dots, axis=-1)
    o = jnp.einsum('bphnm,bphmd->bphnd', attn, v, precision=hi)
    o = o.transpose(0, 1, 3, 2, 4).reshape(B, P, N, inner)
    if not (heads == 1 and head_dim == D):
        o = jnp.einsum('bpni,id->bpnd', o, params["wout"], precision=hi) + params["bout"]
    return o


# ---------------------------------- main ---------------------------------------

if __name__ == "__main__":
    # Small MobileViT-like shapes: (batch, patch_area, num_patches, dim).
    B, P, N, DIM = 2, 4, 16, 64
    HEADS, HEAD_DIM = 4, 16           # inner_dim = 64, project_out = True
    inner = HEADS * HEAD_DIM

    key = jax.random.PRNGKey(0)
    kx, kq, ko = jax.random.split(key, 3)
    x = jax.random.normal(kx, (B, P, N, DIM), jnp.float32)
    params = {
        "wqkv": jax.random.normal(kq, (DIM, 3 * inner), jnp.float32) / jnp.sqrt(DIM),
        "wout": jax.random.normal(ko, (inner, DIM), jnp.float32) / jnp.sqrt(inner),
        "bout": jnp.zeros((DIM,), jnp.float32),
    }

    # Quantize operands to bf16-representable values so the f32 reference and the
    # bf16-MXU kernel see identical inputs (isolates kernel math for the check).
    q16 = lambda t: t.astype(jnp.bfloat16).astype(jnp.float32)
    xq = q16(x)
    pq = {k: q16(v) for k, v in params.items()}

    out = attention_forward(xq, pq, heads=HEADS, head_dim=HEAD_DIM)
    jax.block_until_ready(out)

    assert out.shape == (B, P, N, DIM), out.shape
    assert bool(jnp.isfinite(out).all())

    ref = attention_reference(xq, pq, heads=HEADS, head_dim=HEAD_DIM)
    denom = float(jnp.maximum(jnp.max(jnp.abs(ref)), 1.0))
    err = float(jnp.max(jnp.abs(out - ref))) / denom
    assert err < 0.05, f"mismatch vs reference: {err}"

    print("KERNEL_OK")
</pallas_src>

<mosaic_0001>
module attributes {stable_mosaic.version = 11 : i64} {
  func.func @_attention_kernel(%arg0: i32, %arg1: memref<4x16x64xbf16, #tpu.memory_space<vmem>>, %arg2: memref<64x192xbf16, #tpu.memory_space<vmem>>, %arg3: memref<64x64xbf16, #tpu.memory_space<vmem>>, %arg4: memref<1x64xf32, #tpu.memory_space<vmem>>, %arg5: memref<4x16x64xf32, #tpu.memory_space<vmem>>) attributes {dimension_semantics = [#tpu.dimension_semantics<parallel>], iteration_bounds = array<i64: 2>, scalar_prefetch = 0 : i64, scratch_operands = 0 : i64, tpu.core_type = #tpu.core_type<tc>, window_params = [{transform_indices = @transform_0, window_bounds = array<i64: 4, 16, 64>}, {pipeline_mode = #tpu.pipeline_mode<synchronous>, transform_indices = @transform_1, window_bounds = array<i64: 64, 192>}, {pipeline_mode = #tpu.pipeline_mode<synchronous>, transform_indices = @transform_2, window_bounds = array<i64: 64, 64>}, {pipeline_mode = #tpu.pipeline_mode<synchronous>, transform_indices = @transform_3, window_bounds = array<i64: 1, 64>}, {transform_indices = @transform_4, window_bounds = array<i64: 4, 16, 64>}]} {
    %c0 = arith.constant 0 : index
    %c0_0 = arith.constant 0 : index
    %c0_1 = arith.constant 0 : index
    %0 = vector.load %arg1[%c0, %c0_0, %c0_1] : memref<4x16x64xbf16, #tpu.memory_space<vmem>>, vector<4x16x64xbf16>
    %1 = vector.shape_cast %0 : vector<4x16x64xbf16> to vector<64x64xbf16>
    %c0_2 = arith.constant 0 : index
    %c0_3 = arith.constant 0 : index
    %2 = vector.load %arg2[%c0_2, %c0_3] : memref<64x192xbf16, #tpu.memory_space<vmem>>, vector<64x192xbf16>
    %cst = arith.constant dense<0.000000e+00> : vector<64x192xf32>
    %3 = tpu.matmul %1, %2, %cst {dimension_numbers = #tpu.dot_dimension_numbers<[1], [0], [0], [1], [0, 0, 1, 1], [], []>} : vector<64x64xbf16>, vector<64x192xbf16>, vector<64x192xf32> -> vector<64x192xf32>
    %4 = vector.shape_cast %3 : vector<64x192xf32> to vector<4x16x192xf32>
    %5 = vector.extract_strided_slice %4 {offsets = [0, 0, 0], sizes = [4, 16, 16], strides = [1, 1, 1]} : vector<4x16x192xf32> to vector<4x16x16xf32>
    %cst_4 = arith.constant 2.500000e-01 : f32
    %6 = vector.broadcast %cst_4 : f32 to vector<4x16x16xf32>
    %7 = arith.mulf %5, %6 : vector<4x16x16xf32>
    %8 = arith.truncf %7 : vector<4x16x16xf32> to vector<4x16x16xbf16>
    %9 = vector.extract_strided_slice %4 {offsets = [0, 0, 64], sizes = [4, 16, 16], strides = [1, 1, 1]} : vector<4x16x192xf32> to vector<4x16x16xf32>
    %10 = arith.truncf %9 : vector<4x16x16xf32> to vector<4x16x16xbf16>
    %11 = vector.extract_strided_slice %4 {offsets = [0, 0, 128], sizes = [4, 16, 16], strides = [1, 1, 1]} : vector<4x16x192xf32> to vector<4x16x16xf32>
    %12 = arith.truncf %11 : vector<4x16x16xf32> to vector<4x16x16xbf16>
    "tpu.trace_start"() <{level = 10 : i32, message = "bnd,bmd->bnm"}> : () -> ()
    %cst_5 = arith.constant dense<0.000000e+00> : vector<4x16x16xf32>
    %13 = tpu.matmul %8, %10, %cst_5 {dimension_numbers = #tpu.dot_dimension_numbers<[2], [2], [1], [1], [0, 0, 0, 1, 1, 1], [0], [0]>} : vector<4x16x16xbf16>, vector<4x16x16xbf16>, vector<4x16x16xf32> -> vector<4x16x16xf32>
    "tpu.trace_stop"() : () -> ()
    %cst_6 = arith.constant dense<0xFF800000> : vector<4x16xf32>
    %14 = vector.multi_reduction <maximumf>, %13, %cst_6 [2] : vector<4x16x16xf32> to vector<4x16xf32>
    %15 = vector.shape_cast %14 : vector<4x16xf32> to vector<4x16x1xf32>
    %16 = vector.broadcast %15 : vector<4x16x1xf32> to vector<4x16x16xf32>
    %17 = arith.subf %13, %16 : vector<4x16x16xf32>
    %18 = math.exp %17 : vector<4x16x16xf32>
    %cst_7 = arith.constant dense<0.000000e+00> : vector<4x16xf32>
    %19 = vector.multi_reduction <add>, %18, %cst_7 [2] : vector<4x16x16xf32> to vector<4x16xf32>
    %20 = vector.shape_cast %19 : vector<4x16xf32> to vector<4x16x1xf32>
    %21 = tpu.reciprocal %20 {approx = true} : vector<4x16x1xf32> -> vector<4x16x1xf32>
    %22 = vector.broadcast %21 : vector<4x16x1xf32> to vector<4x16x16xf32>
    %23 = arith.mulf %18, %22 : vector<4x16x16xf32>
    %24 = arith.truncf %23 : vector<4x16x16xf32> to vector<4x16x16xbf16>
    "tpu.trace_start"() <{level = 10 : i32, message = "bnm,bmd->bnd"}> : () -> ()
    %cst_8 = arith.constant dense<0.000000e+00> : vector<4x16x16xf32>
    %25 = tpu.matmul %24, %12, %cst_8 {dimension_numbers = #tpu.dot_dimension_numbers<[2], [1], [1], [2], [0, 0, 0, 1, 1, 2], [0], [0]>} : vector<4x16x16xbf16>, vector<4x16x16xbf16>, vector<4x16x16xf32> -> vector<4x16x16xf32>
    "tpu.trace_stop"() : () -> ()
    %26 = vector.shape_cast %25 : vector<4x16x16xf32> to vector<64x16xf32>
    %27 = arith.truncf %26 : vector<64x16xf32> to vector<64x16xbf16>
    %c0_9 = arith.constant 0 : index
    %c0_10 = arith.constant 0 : index
    %28 = vector.load %arg3[%c0_9, %c0_10] : memref<64x64xbf16, #tpu.memory_space<vmem>>, vector<16x64xbf16>
    %cst_11 = arith.constant dense<0.000000e+00> : vector<64x64xf32>
    %29 = tpu.matmul %27, %28, %cst_11 {dimension_numbers = #tpu.dot_dimension_numbers<[1], [0], [0], [1], [0, 0, 1, 1], [], []>} : vector<64x16xbf16>, vector<16x64xbf16>, vector<64x64xf32> -> vector<64x64xf32>
    %30 = vector.extract_strided_slice %4 {offsets = [0, 0, 16], sizes = [4, 16, 16], strides = [1, 1, 1]} : vector<4x16x192xf32> to vector<4x16x16xf32>
    %cst_12 = arith.constant 2.500000e-01 : f32
    %31 = vector.broadcast %cst_12 : f32 to vector<4x16x16xf32>
    %32 = arith.mulf %30, %31 : vector<4x16x16xf32>
    %33 = arith.truncf %32 : vector<4x16x16xf32> to vector<4x16x16xbf16>
    %34 = vector.extract_strided_slice %4 {offsets = [0, 0, 80], sizes = [4, 16, 16], strides = [1, 1, 1]} : vector<4x16x192xf32> to vector<4x16x16xf32>
    %35 = arith.truncf %34 : vector<4x16x16xf32> to vector<4x16x16xbf16>
    %36 = vector.extract_strided_slice %4 {offsets = [0, 0, 144], sizes = [4, 16, 16], strides = [1, 1, 1]} : vector<4x16x192xf32> to vector<4x16x16xf32>
    %37 = arith.truncf %36 : vector<4x16x16xf32> to vector<4x16x16xbf16>
    "tpu.trace_start"() <{level = 10 : i32, message = "bnd,bmd->bnm"}> : () -> ()
    %cst_13 = arith.constant dense<0.000000e+00> : vector<4x16x16xf32>
    %38 = tpu.matmul %33, %35, %cst_13 {dimension_numbers = #tpu.dot_dimension_numbers<[2], [2], [1], [1], [0, 0, 0, 1, 1, 1], [0], [0]>} : vector<4x16x16xbf16>, vector<4x16x16xbf16>, vector<4x16x16xf32> -> vector<4x16x16xf32>
    "tpu.trace_stop"() : () -> ()
    %cst_14 = arith.constant dense<0xFF800000> : vector<4x16xf32>
    %39 = vector.multi_reduction <maximumf>, %38, %cst_14 [2] : vector<4x16x16xf32> to vector<4x16xf32>
    %40 = vector.shape_cast %39 : vector<4x16xf32> to vector<4x16x1xf32>
    %41 = vector.broadcast %40 : vector<4x16x1xf32> to vector<4x16x16xf32>
    %42 = arith.subf %38, %41 : vector<4x16x16xf32>
    %43 = math.exp %42 : vector<4x16x16xf32>
    %cst_15 = arith.constant dense<0.000000e+00> : vector<4x16xf32>
    %44 = vector.multi_reduction <add>, %43, %cst_15 [2] : vector<4x16x16xf32> to vector<4x16xf32>
    %45 = vector.shape_cast %44 : vector<4x16xf32> to vector<4x16x1xf32>
    %46 = tpu.reciprocal %45 {approx = true} : vector<4x16x1xf32> -> vector<4x16x1xf32>
    %47 = vector.broadcast %46 : vector<4x16x1xf32> to vector<4x16x16xf32>
    %48 = arith.mulf %43, %47 : vector<4x16x16xf32>
    %49 = arith.truncf %48 : vector<4x16x16xf32> to vector<4x16x16xbf16>
    "tpu.trace_start"() <{level = 10 : i32, message = "bnm,bmd->bnd"}> : () -> ()
    %cst_16 = arith.constant dense<0.000000e+00> : vector<4x16x16xf32>
    %50 = tpu.matmul %49, %37, %cst_16 {dimension_numbers = #tpu.dot_dimension_numbers<[2], [1], [1], [2], [0, 0, 0, 1, 1, 2], [0], [0]>} : vector<4x16x16xbf16>, vector<4x16x16xbf16>, vector<4x16x16xf32> -> vector<4x16x16xf32>
    "tpu.trace_stop"() : () -> ()
    %51 = vector.shape_cast %50 : vector<4x16x16xf32> to vector<64x16xf32>
    %52 = arith.truncf %51 : vector<64x16xf32> to vector<64x16xbf16>
    %c16 = arith.constant 16 : index
    %c0_17 = arith.constant 0 : index
    %53 = vector.load %arg3[%c16, %c0_17] : memref<64x64xbf16, #tpu.memory_space<vmem>>, vector<16x64xbf16>
    %cst_18 = arith.constant dense<0.000000e+00> : vector<64x64xf32>
    %54 = tpu.matmul %52, %53, %cst_18 {dimension_numbers = #tpu.dot_dimension_numbers<[1], [0], [0], [1], [0, 0, 1, 1], [], []>} : vector<64x16xbf16>, vector<16x64xbf16>, vector<64x64xf32> -> vector<64x64xf32>
    %55 = arith.addf %29, %54 : vector<64x64xf32>
    %56 = vector.extract_strided_slice %4 {offsets = [0, 0, 32], sizes = [4, 16, 16], strides = [1, 1, 1]} : vector<4x16x192xf32> to vector<4x16x16xf32>
    %cst_19 = arith.constant 2.500000e-01 : f32
    %57 = vector.broadcast %cst_19 : f32 to vector<4x16x16xf32>
    %58 = arith.mulf %56, %57 : vector<4x16x16xf32>
    %59 = arith.truncf %58 : vector<4x16x16xf32> to vector<4x16x16xbf16>
    %60 = vector.extract_strided_slice %4 {offsets = [0, 0, 96], sizes = [4, 16, 16], strides = [1, 1, 1]} : vector<4x16x192xf32> to vector<4x16x16xf32>
    %61 = arith.truncf %60 : vector<4x16x16xf32> to vector<4x16x16xbf16>
    %62 = vector.extract_strided_slice %4 {offsets = [0, 0, 160], sizes = [4, 16, 16], strides = [1, 1, 1]} : vector<4x16x192xf32> to vector<4x16x16xf32>
    %63 = arith.truncf %62 : vector<4x16x16xf32> to vector<4x16x16xbf16>
    "tpu.trace_start"() <{level = 10 : i32, message = "bnd,bmd->bnm"}> : () -> ()
    %cst_20 = arith.constant dense<0.000000e+00> : vector<4x16x16xf32>
    %64 = tpu.matmul %59, %61, %cst_20 {dimension_numbers = #tpu.dot_dimension_numbers<[2], [2], [1], [1], [0, 0, 0, 1, 1, 1], [0], [0]>} : vector<4x16x16xbf16>, vector<4x16x16xbf16>, vector<4x16x16xf32> -> vector<4x16x16xf32>
    "tpu.trace_stop"() : () -> ()
    %cst_21 = arith.constant dense<0xFF800000> : vector<4x16xf32>
    %65 = vector.multi_reduction <maximumf>, %64, %cst_21 [2] : vector<4x16x16xf32> to vector<4x16xf32>
    %66 = vector.shape_cast %65 : vector<4x16xf32> to vector<4x16x1xf32>
    %67 = vector.broadcast %66 : vector<4x16x1xf32> to vector<4x16x16xf32>
    %68 = arith.subf %64, %67 : vector<4x16x16xf32>
    %69 = math.exp %68 : vector<4x16x16xf32>
    %cst_22 = arith.constant dense<0.000000e+00> : vector<4x16xf32>
    %70 = vector.multi_reduction <add>, %69, %cst_22 [2] : vector<4x16x16xf32> to vector<4x16xf32>
    %71 = vector.shape_cast %70 : vector<4x16xf32> to vector<4x16x1xf32>
    %72 = tpu.reciprocal %71 {approx = true} : vector<4x16x1xf32> -> vector<4x16x1xf32>
    %73 = vector.broadcast %72 : vector<4x16x1xf32> to vector<4x16x16xf32>
    %74 = arith.mulf %69, %73 : vector<4x16x16xf32>
    %75 = arith.truncf %74 : vector<4x16x16xf32> to vector<4x16x16xbf16>
    "tpu.trace_start"() <{level = 10 : i32, message = "bnm,bmd->bnd"}> : () -> ()
    %cst_23 = arith.constant dense<0.000000e+00> : vector<4x16x16xf32>
    %76 = tpu.matmul %75, %63, %cst_23 {dimension_numbers = #tpu.dot_dimension_numbers<[2], [1], [1], [2], [0, 0, 0, 1, 1, 2], [0], [0]>} : vector<4x16x16xbf16>, vector<4x16x16xbf16>, vector<4x16x16xf32> -> vector<4x16x16xf32>
    "tpu.trace_stop"() : () -> ()
    %77 = vector.shape_cast %76 : vector<4x16x16xf32> to vector<64x16xf32>
    %78 = arith.truncf %77 : vector<64x16xf32> to vector<64x16xbf16>
    %c32 = arith.constant 32 : index
    %c0_24 = arith.constant 0 : index
    %79 = vector.load %arg3[%c32, %c0_24] : memref<64x64xbf16, #tpu.memory_space<vmem>>, vector<16x64xbf16>
    %cst_25 = arith.constant dense<0.000000e+00> : vector<64x64xf32>
    %80 = tpu.matmul %78, %79, %cst_25 {dimension_numbers = #tpu.dot_dimension_numbers<[1], [0], [0], [1], [0, 0, 1, 1], [], []>} : vector<64x16xbf16>, vector<16x64xbf16>, vector<64x64xf32> -> vector<64x64xf32>
    %81 = arith.addf %55, %80 : vector<64x64xf32>
    %82 = vector.extract_strided_slice %4 {offsets = [0, 0, 48], sizes = [4, 16, 16], strides = [1, 1, 1]} : vector<4x16x192xf32> to vector<4x16x16xf32>
    %cst_26 = arith.constant 2.500000e-01 : f32
    %83 = vector.broadcast %cst_26 : f32 to vector<4x16x16xf32>
    %84 = arith.mulf %82, %83 : vector<4x16x16xf32>
    %85 = arith.truncf %84 : vector<4x16x16xf32> to vector<4x16x16xbf16>
    %86 = vector.extract_strided_slice %4 {offsets = [0, 0, 112], sizes = [4, 16, 16], strides = [1, 1, 1]} : vector<4x16x192xf32> to vector<4x16x16xf32>
    %87 = arith.truncf %86 : vector<4x16x16xf32> to vector<4x16x16xbf16>
    %88 = vector.extract_strided_slice %4 {offsets = [0, 0, 176], sizes = [4, 16, 16], strides = [1, 1, 1]} : vector<4x16x192xf32> to vector<4x16x16xf32>
    %89 = arith.truncf %88 : vector<4x16x16xf32> to vector<4x16x16xbf16>
    "tpu.trace_start"() <{level = 10 : i32, message = "bnd,bmd->bnm"}> : () -> ()
    %cst_27 = arith.constant dense<0.000000e+00> : vector<4x16x16xf32>
    %90 = tpu.matmul %85, %87, %cst_27 {dimension_numbers = #tpu.dot_dimension_numbers<[2], [2], [1], [1], [0, 0, 0, 1, 1, 1], [0], [0]>} : vector<4x16x16xbf16>, vector<4x16x16xbf16>, vector<4x16x16xf32> -> vector<4x16x16xf32>
    "tpu.trace_stop"() : () -> ()
    %cst_28 = arith.constant dense<0xFF800000> : vector<4x16xf32>
    %91 = vector.multi_reduction <maximumf>, %90, %cst_28 [2] : vector<4x16x16xf32> to vector<4x16xf32>
    %92 = vector.shape_cast %91 : vector<4x16xf32> to vector<4x16x1xf32>
    %93 = vector.broadcast %92 : vector<4x16x1xf32> to vector<4x16x16xf32>
    %94 = arith.subf %90, %93 : vector<4x16x16xf32>
    %95 = math.exp %94 : vector<4x16x16xf32>
    %cst_29 = arith.constant dense<0.000000e+00> : vector<4x16xf32>
    %96 = vector.multi_reduction <add>, %95, %cst_29 [2] : vector<4x16x16xf32> to vector<4x16xf32>
    %97 = vector.shape_cast %96 : vector<4x16xf32> to vector<4x16x1xf32>
    %98 = tpu.reciprocal %97 {approx = true} : vector<4x16x1xf32> -> vector<4x16x1xf32>
    %99 = vector.broadcast %98 : vector<4x16x1xf32> to vector<4x16x16xf32>
    %100 = arith.mulf %95, %99 : vector<4x16x16xf32>
    %101 = arith.truncf %100 : vector<4x16x16xf32> to vector<4x16x16xbf16>
    "tpu.trace_start"() <{level = 10 : i32, message = "bnm,bmd->bnd"}> : () -> ()
    %cst_30 = arith.constant dense<0.000000e+00> : vector<4x16x16xf32>
    %102 = tpu.matmul %101, %89, %cst_30 {dimension_numbers = #tpu.dot_dimension_numbers<[2], [1], [1], [2], [0, 0, 0, 1, 1, 2], [0], [0]>} : vector<4x16x16xbf16>, vector<4x16x16xbf16>, vector<4x16x16xf32> -> vector<4x16x16xf32>
    "tpu.trace_stop"() : () -> ()
    %103 = vector.shape_cast %102 : vector<4x16x16xf32> to vector<64x16xf32>
    %104 = arith.truncf %103 : vector<64x16xf32> to vector<64x16xbf16>
    %c48 = arith.constant 48 : index
    %c0_31 = arith.constant 0 : index
    %105 = vector.load %arg3[%c48, %c0_31] : memref<64x64xbf16, #tpu.memory_space<vmem>>, vector<16x64xbf16>
    %cst_32 = arith.constant dense<0.000000e+00> : vector<64x64xf32>
    %106 = tpu.matmul %104, %105, %cst_32 {dimension_numbers = #tpu.dot_dimension_numbers<[1], [0], [0], [1], [0, 0, 1, 1], [], []>} : vector<64x16xbf16>, vector<16x64xbf16>, vector<64x64xf32> -> vector<64x64xf32>
    %107 = arith.addf %81, %106 : vector<64x64xf32>
    %c0_33 = arith.constant 0 : index
    %c0_34 = arith.constant 0 : index
    %108 = vector.load %arg4[%c0_33, %c0_34] : memref<1x64xf32, #tpu.memory_space<vmem>>, vector<1x64xf32>
    %109 = vector.broadcast %108 : vector<1x64xf32> to vector<64x64xf32>
    %110 = arith.addf %107, %109 : vector<64x64xf32>
    %111 = vector.shape_cast %110 : vector<64x64xf32> to vector<4x16x64xf32>
    %c0_35 = arith.constant 0 : index
    %c0_36 = arith.constant 0 : index
    %c0_37 = arith.constant 0 : index
    %112 = vector.load %arg5[%c0_35, %c0_36, %c0_37] : memref<4x16x64xf32, #tpu.memory_space<vmem>>, vector<4x16x64xf32>
    tpu.vector_store %arg5[%c0_35, %c0_36, %c0_37], %111 {strides = array<i32>} : memref<4x16x64xf32, #tpu.memory_space<vmem>>, vector<4x16x64xf32>,
    return
  }
  func.func @transform_0(%arg0: i32) -> (i32, i32, i32) {
    %c0_i32 = arith.constant 0 : i32
    %c0_i32_0 = arith.constant 0 : i32
    %c0_i32_1 = arith.constant 0 : i32
    return %arg0, %c0_i32, %c0_i32_0 : i32, i32, i32
  }
  func.func @transform_1(%arg0: i32) -> (i32, i32) {
    %c0_i32 = arith.constant 0 : i32
    %c0_i32_0 = arith.constant 0 : i32
    %c0_i32_1 = arith.constant 0 : i32
    return %c0_i32, %c0_i32_0 : i32, i32
  }
  func.func @transform_2(%arg0: i32) -> (i32, i32) {
    %c0_i32 = arith.constant 0 : i32
    %c0_i32_0 = arith.constant 0 : i32
    %c0_i32_1 = arith.constant 0 : i32
    return %c0_i32, %c0_i32_0 : i32, i32
  }
  func.func @transform_3(%arg0: i32) -> (i32, i32) {
    %c0_i32 = arith.constant 0 : i32
    %c0_i32_0 = arith.constant 0 : i32
    %c0_i32_1 = arith.constant 0 : i32
    return %c0_i32, %c0_i32_0 : i32, i32
  }
  func.func @transform_4(%arg0: i32) -> (i32, i32, i32) {
    %c0_i32 = arith.constant 0 : i32
    %c0_i32_0 = arith.constant 0 : i32
    %c0_i32_1 = arith.constant 0 : i32
    return %arg0, %c0_i32, %c0_i32_0 : i32, i32, i32
  }
}

</mosaic_0001>

<bundles_post_ra>
// kernel: attention_forward.1
= control target key start
LH: loop header
LB: loop body
LE: loop exit
PB: predicated region body
PF: predicated region fallthrough
CT: control target
= control target key end

     0   :  { %9 = vsyncpa [#allocation3], 0  ;;  %s3108_s0 = inlined_call_operand.vmem [shape: bf16[8,16,64], index: 0, kind: input, shape index: {}]   ;;  %s3109_s1 = inlined_call_operand.vmem [shape: bf16[64,192], index: 1, kind: input, shape index: {}]   ;;  %s3110_s2 = inlined_call_operand.vmem [shape: bf16[64,64], index: 2, kind: input, shape index: {}]   ;;  %s3111_s3 = inlined_call_operand.vmem [shape: f32[1,64], index: 3, kind: input, shape index: {}]   ;;  %s3112_s4 = inlined_call_operand.hbm [shape: f32[8,16,64], index: 4, kind: output, shape index: {}]  }
   0x1   :  { %11 = vsyncpa [#allocation3 + $0x1], 0  ;;  %s2351_s15 = smov 0   ;;  %s2353_s16 = smov 0  }
   0x2   :  { %s2355_s17 = smov 0   ;;  %s2357_s18 = smov 0  }
   0x3 LB: > { %s2372_s19 = sadd.s32 4294967295, %s2315_s18   ;;  %s1922_s20 = sadd.s32 4294967294, %s2315_s18   ;;  %s2315_s18 = sphi %s2357_s18, %s3118_s18   ;;  %s2311_s17 = sphi %s2355_s17, %s3117_s17   ;;  %s2307_s16 = sphi %s2353_s16, %s3116_s16   ;;  %s2303_s15 = sphi %s2351_s15, %s3115_s15  }
   0x4   : > { %s2376_s21 = sadd.s32 1, %s2315_s18   ;;  %s113_s22 = sadd.s32 1, %s2311_s17 }
   0x5   : > { %s110_s23 = ssub.s32 %s2315_s18, %s2376_s21  ;;  %p123_p0 = scmp.ne.s32.totalorder %s2311_s17, %s2307_s16 }
   0x6   : > { %p111_p1 = scmp.eq.s32.totalorder %s110_s23, 0  ;;  %p124_p2 = scmp.eq.s32.totalorder %s2372_s19, 1 }
   0x7   : > { %p129_p3 = scmp.ne.s32.totalorder %s2307_s16, %s2303_s15  ;;  %p130_p4 = scmp.eq.s32.totalorder %s1922_s20, 1 }
   0x8   : > { %s2387_s24 = scalar_select %p111_p1, %s2311_s17, %s113_s22  }
   0x9   : > { %p2389_p5 = por %p124_p2, %p123_p0  ;;  %p2393_p6 = por %p130_p4, %p129_p3 }
   0xa   : > { %p1925_p7 = scmp.ge.s32.totalorder %s2315_s18, 1  ;;  %p167_p8 = scmp.lt.s32.totalorder %s2315_s18, 3 }
   0xc   : > { %p168_p9 = pnand %p1925_p7, %p167_p8 }
   0xd   : > { %s1927_s9 = sshll.u32 (!%p168_p9), %s2372_s19, 2  ;;  %s2317_s5 = smov (!%p168_p9), 64  }
   0xe   : > { %171 = sbr.rel (%p168_p9) target bundleno = 2157 (0x86d), region = 36  ;;  %p195_p10 = scmp.lt.s32.totalorder (!%p168_p9), %s1927_s9, 7 }
   0xf   : > { %s2318_s6 = smov (!%p168_p9), 48   ;;  %s2319_s28 = smov (!%p168_p9), 112  }
  0x10   : > { %s2323_s10 = smov (!%p168_p9), 80   ;;  %s2273_s23 = scalar_lea.hbm (!%p168_p9), %s3112_s4, 128 }
  0x13   : > { %v1972_v0 = vld [vmem:[%s3109_s1 + $0x30] sm:$0xf]  ;;  %v2068_v1 = vld [vmem:[%s3109_s1 + $0x34] sm:$0xf0]  ;;  %v1964_v2 = vld [vmem:[%s3109_s1 + $0x20] sm:$0xf] }
  0x14   : > { %v1973_v3 = vor.u32 %v2068_v1, %v1972_v0  ;;  %v2066_v4 = vld [vmem:[%s3109_s1 + $0x24] sm:$0xf0]  ;;  %v1956_v6 = vld [vmem:[%s3109_s1 + $0x10] sm:$0xf]  ;;  %v2064_v7 = vld [vmem:[%s3109_s1 + $0x14] sm:$0xf0] }
  0x15   : > { %v1965_v5 = vor.u32 %v2066_v4, %v1964_v2  ;;  %s3120_s9 = smov (!%p195_p10, %s1927_s9), 7  ;;  %v1957_v8 = vor.u32 %v2064_v7, %v1956_v6  ;;  %v1948_v9 = vld [vmem:[%s3109_s1] sm:$0xf]  ;;  %v2062_v10 = vld [vmem:[%s3109_s1 + $0x4] sm:$0xf0]  ;;  %vm279_vm0 = vcmask 523264  }
  0x16   : > { %296 = vmatpush.bf16.msra.mxu0 %v1973_v3  ;;  %s2056_s27 = sshll.u32 %s3120_s9, 3  ;;  %v1949_v11 = vor.u32 %v2062_v10, %v1948_v9  ;;  %v2067_v36 = vld [vmem:[%s3109_s1 + $0x34] sm:$0xf]  ;;  %v1974_v37 = vld [vmem:[%s3109_s1 + $0x38] sm:$0xf0]  ;;  %vm394_vm1 = vcmask 130048  }
  0x17   : > { %s199_s30 = scalar_lea.vmem %s3108_s0, %s2056_s27  ;;  %v2065_v38 = vld [vmem:[%s3109_s1 + $0x24] sm:$0xf]  ;;  %v1977_v40 = vor.u32 %v2067_v36, %v1974_v37  ;;  %v1966_v41 = vld [vmem:[%s3109_s1 + $0x28] sm:$0xf0]  ;;  %v2063_v45 = vld [vmem:[%s3109_s1 + $0x14] sm:$0xf] }
  0x18   : > { %v2427_v12 = vld [vmem:[%s199_s30] sm:$0xff]  ;;  %v2431_v13 = vld [vmem:[%s199_s30 + $0x8] sm:$0xff]  ;;  %v2435_v14 = vld [vmem:[%s199_s30 + $0x10] sm:$0xff]  ;;  %v1969_v43 = vor.u32 %v2065_v38, %v1966_v41  ;;  %s2321_s9 = smov 96  }
  0x19   : > { %v2439_v15 = vld [vmem:[%s199_s30 + $0x18] sm:$0xff]  ;;  %325 = vmatpush.bf16.msra.mxu1 %v1977_v40  ;;  %v2061_v50 = vld [vmem:[%s3109_s1 + $0x4] sm:$0xf]  ;;  %v1950_v51 = vld [vmem:[%s3109_s1 + $0x8] sm:$0xf0] }
  0x1a   : > { %297 = vmatpush.bf16.msra.mxu0 %v1965_v5  ;;  %v1958_v46 = vld [vmem:[%s3109_s1 + $0x18] sm:$0xf0]  ;;  %v1953_v55 = vor.u32 %v2061_v50, %v1950_v51 }
  0x1b   : > { %v1961_v48 = vor.u32 %v2063_v45, %v1958_v46 }
  0x1d   : > { %326 = vmatpush.bf16.msra.mxu1 %v1969_v43 }
  0x1e   : > { %298 = vmatpush.bf16.msra.mxu0 %v1957_v8 }
  0x21   : > { %327 = vmatpush.bf16.msra.mxu1 %v1961_v48 }
  0x22   : > { %299 = vmatpush.bf16.msra.mxu0 %v1949_v11 }
  0x25   : > { %1978 = vmatmul.msk.bf16.vlgmr.msra.gmra.mxu0 %vm279_vm0, %v2427_v12  ;;  %328 = vmatpush.bf16.msra.mxu1 %v1953_v55 }
  0x28   : > { %1982 = vmatmul.msk.bf16.vlgmr.msra.gmra.mxu1 %vm279_vm0, %v2427_v12 }
  0x35   : > { %1979 = vmatmul.msk.bf16.gmra.mxu0 %vm279_vm0, %v2431_v13 }
  0x38   : > { %1983 = vmatmul.msk.bf16.gmra.mxu1 %vm279_vm0, %v2431_v13 }
  0x45   : > { %1980 = vmatmul.msk.bf16.gmra.mxu0 %vm279_vm0, %v2435_v14 }
  0x48   : > { %1984 = vmatmul.msk.bf16.gmra.mxu1 %vm279_vm0, %v2435_v14 }
  0x55   : > { %1981 = vmatmul.msk.bf16.gmra.mxu0 %vm279_vm0, %v2439_v15 }
  0x58   : > { %1985 = vmatmul.msk.bf16.gmra.mxu1 %vm279_vm0, %v2439_v15 }
  0xa2   : > { %v2443_v16 = vpop.f32.mrf.mxu0 }
  0xa3   : > { %v366_v62 = vpack.c.bf16 %v2443_v16, %v2443_v16 }
  0xa5   : > { %v389_v2 = vunpack.c.l.b16 %v366_v62 }
  0xaa   : > { %v2445_v17 = vpop.f32.mrf.mxu0 }
  0xab   : > { %v367_v59 = vpack.c.bf16 %v2445_v17, %v2445_v17 }
  0xad   : > { %v390_v0 = vunpack.c.l.b16 %v367_v59 }
  0xaf   : > { %v2503_v4 = vpack.c.b16 %v390_v0, %v389_v2 }
  0xb2   : > { %v2447_v18 = vpop.f32.mrf.mxu0 }
  0xb3   : > { %v368_v19 = vpack.c.bf16 %v2447_v18, %v2447_v18  ;;  %v352_v7 = vmul.f32 0.25, %v2447_v18 }
  0xb5   : > { %v422_v22 = vunpack.c.l.b16 %v368_v19  ;;  %v360_v11 = vpack.c.bf16 %v352_v7, %v352_v7 }
  0xb7   : > { %v417_v14 = vunpack.c.l.b16 %v360_v11 }
  0xba   : > { %v2451_v20 = vpop.f32.mrf.mxu0 }
  0xbb   : > { %v369_v21 = vpack.c.bf16 %v2451_v20, %v2451_v20  ;;  %v353_v6 = vmul.f32 0.25, %v2451_v20 }
  0xbd   : > { %v423_v23 = vunpack.c.l.b16 %v369_v21  ;;  %v361_v8 = vpack.c.bf16 %v353_v6, %v353_v6 }
  0xbf   : > { %v2455_v24 = vpack.c.b16 %v423_v23, %v422_v22  ;;  %v418_v13 = vunpack.c.l.b16 %v361_v8 }
  0xc1   : > { %425 = vrot.lane.b32.xlu0 %v2455_v24, %s2317_s5  ;;  %v2523_v21 = vpack.c.b16 %v418_v13, %v417_v14 }
  0xc2   : > { %v311_v25 = vpop.f32.mrf.mxu0 }
  0xc3   : > { %v370_v26 = vpack.c.bf16 %v311_v25, %v311_v25  ;;  %v354_v30 = vmul.f32 0.25, %v311_v25  ;;  %v351_v25 = vmul.f32 0.25, %v2445_v17 }
  0xc5   : > { %v454_v31 = vunpack.c.l.b16 %v370_v26  ;;  %v362_v35 = vpack.c.bf16 %v354_v30, %v354_v30  ;;  %v350_v26 = vmul.f32 0.25, %v2443_v16 }
  0xc7   : > { %v449_v44 = vunpack.c.l.b16 %v362_v35  ;;  %v358_v30 = vpack.c.bf16 %v350_v26, %v350_v26  ;;  %v330_v35 = vpop.f32.mrf.mxu1 }
  0xc8   : > { %v374_v37 = vpack.c.bf16 %v330_v35, %v330_v35 }
  0xca   : > { %v313_v27 = vpop.f32.mrf.mxu0 }
  0xcb   : > { %v355_v28 = vmul.f32 0.25, %v313_v27  ;;  %v371_v29 = vpack.c.bf16 %v313_v27, %v313_v27  ;;  %v359_v27 = vpack.c.bf16 %v351_v25, %v351_v25 }
  0xcd   : > { %v455_v32 = vunpack.c.l.b16 %v371_v29  ;;  %v363_v33 = vpack.c.bf16 %v355_v28, %v355_v28 }
  0xcf   : > { %v2459_v34 = vpack.c.b16 %v455_v32, %v454_v31  ;;  %v450_v42 = vunpack.c.l.b16 %v363_v33  ;;  %v385_v32 = vunpack.c.l.b16 %v359_v27  ;;  %v384_v33 = vunpack.c.l.b16 %v358_v30  ;;  %v332_v38 = vpop.f32.mrf.mxu1 }
  0xd0   : > { %v375_v40 = vpack.c.bf16 %v332_v38, %v332_v38 }
  0xd1   : > { %775 = vrot.lane.b32.xlu2 %v2459_v34, %s2318_s6  ;;  %v2481_v47 = vpack.c.b16 %v450_v42, %v449_v44  ;;  %v2536_v36 = vpack.c.b16 %v385_v32, %v384_v33 }
  0xd2   : > { %v316_v39 = vpop.f32.mrf.mxu0  ;;  %v615_v41 = vunpack.c.l.b16 %v375_v40 }
  0xd3   : > { %v372_v49 = vpack.c.bf16 %v316_v39, %v316_v39  ;;  %v356_v56 = vmul.f32 0.25, %v316_v39  ;;  %v614_v39 = vunpack.c.l.b16 %v374_v37 }
  0xd5   : > { %v486_v57 = vunpack.c.l.b16 %v372_v49  ;;  %v364_v63 = vpack.c.bf16 %v356_v56, %v356_v56  ;;  %v2541_v42 = vpack.c.b16 %v615_v41, %v614_v39 }
  0xd7   : > { %v481_v3 = vunpack.c.l.b16 %v364_v63  ;;  %v335_v43 = vpop.f32.mrf.mxu1 }
  0xd8   : > { %v376_v44 = vpack.c.bf16 %v335_v43, %v335_v43 }
  0xd9   : > { %773 = vrot.lane.b32.xlu2 %v2481_v47, %s2319_s28 }
  0xda   : > { %v318_v52 = vpop.f32.mrf.mxu0  ;;  %v642_v46 = vunpack.c.l.b16 %v376_v44 }
  0xdb   : > { %v357_v53 = vmul.f32 0.25, %v318_v52  ;;  %v373_v54 = vpack.c.bf16 %v318_v52, %v318_v52 }
  0xdd   : > { %v487_v58 = vunpack.c.l.b16 %v373_v54  ;;  %v365_v60 = vpack.c.bf16 %v357_v53, %v357_v53 }
  0xdf   : > { %v2493_v61 = vpack.c.b16 %v487_v58, %v486_v57  ;;  %v482_v1 = vunpack.c.l.b16 %v365_v60  ;;  %v337_v45 = vpop.f32.mrf.mxu1 }
  0xe0   : > { %v377_v48 = vpack.c.bf16 %v337_v45, %v337_v45 }
  0xe1   : > { %799 = vrot.lane.b32.xlu1 %v2493_v61, %s2318_s6  ;;  %489 = vrot.lane.b32.xlu0 %v2493_v61, %s2317_s5  ;;  %v2505_v5 = vpack.c.b16 %v482_v1, %v481_v3 }
  0xe2   : > { %v643_v49 = vunpack.c.l.b16 %v377_v48 }
  0xe4   : > { %v2546_v50 = vpack.c.b16 %v643_v49, %v642_v46 }
  0xe7   : > { %v340_v51 = vpop.f32.mrf.mxu1 }
  0xe8   : > { %v378_v52 = vpack.c.bf16 %v340_v51, %v340_v51 }
  0xe9   : > { %392 = vrot.lane.b32.xlu0 %v2503_v4, %s2317_s5  ;;  %797 = vrot.lane.b32.xlu1 %v2505_v5, %s2319_s28 }
  0xea   : > { %v670_v54 = vunpack.c.l.b16 %v378_v52 }
  0xef   : > { %v342_v53 = vpop.f32.mrf.mxu1 }
  0xf0   : > { %v379_v55 = vpack.c.bf16 %v342_v53, %v342_v53 }
  0xf1   : > { %457 = vrot.lane.b32.xlu1 %v2459_v34, %s2317_s5  ;;  %s2320_s5 = smov 32  }
  0xf2   : > { %v671_v56 = vunpack.c.l.b16 %v379_v55 }
  0xf4   : > { %v2549_v57 = vpack.c.b16 %v671_v56, %v670_v54 }
  0xf7   : > { %v345_v58 = vpop.f32.mrf.mxu1 }
  0xf8   : > { %v380_v59 = vpack.c.bf16 %v345_v58, %v345_v58 }
  0xfa   : > { %v698_v62 = vunpack.c.l.b16 %v380_v59 }
  0xff   : > { %v347_v60 = vpop.f32.mrf.mxu1 }
 0x100   : > { %v381_v63 = vpack.c.bf16 %v347_v60, %v347_v60 }
 0x102   : > { %v699_v0 = vunpack.c.l.b16 %v381_v63 }
 0x104   : > { %v2552_v1 = vpack.c.b16 %v699_v0, %v698_v62 }
 0x12b   : > { %v776_v9 = vpop.permute.xlu2 %775 }
 0x12c   : > { %v781_v19 = vsel %vm394_vm1, %v776_v9, 0 }
 0x133   : > { %v426_v10 = vpop.permute.xlu0 %425  ;;  %v774_v15 = vpop.permute.xlu2 %773 }
 0x134   : > { %v431_v12 = vsel %vm394_vm1, %v426_v10, 0 }
 0x135   : > { %440 = vmatpush.bf16.xpose.msrb.mxu0 %v431_v12 }
 0x13c   : > { %1987 = vmatmul.msk.bf16.vlgmr.msrb.gmra.mxu0 %vm394_vm1, %v2523_v21 }
 0x13d   : > { %790 = vmatpush.bf16.xpose.msra.mxu0 %v781_v19 }
 0x14c   : > { %1996 = vmatmul.msk.bf16.vlgmr.msra.gmra.mxu0 %vm394_vm1, %v774_v15 }
 0x153   : > { %v800_v18 = vpop.permute.xlu1 %799  ;;  %v490_v20 = vpop.permute.xlu0 %489 }
 0x154   : > { %v495_v22 = vsel %vm394_vm1, %v490_v20, 0  ;;  %v805_v23 = vsel %vm394_vm1, %v800_v18, 0 }
 0x155   : > { %504 = vmatpush.bf16.xpose.msra.mxu3 %v495_v22  ;;  %814 = vmatpush.bf16.xpose.msrb.mxu1 %v805_v23 }
 0x15b   : > { %v393_v28 = vpop.permute.xlu0 %392  ;;  %v798_v29 = vpop.permute.xlu1 %797 }
 0x15c   : > { %1989 = vmatmul.msk.bf16.vlgmr.msra.gmra.mxu3 %vm394_vm1, %v2505_v5  ;;  %1997 = vmatmul.msk.bf16.vlgmr.msrb.gmra.mxu1 %vm394_vm1, %v798_v29  ;;  %v399_v31 = vsel %vm394_vm1, %v393_v28, 0 }
 0x15d   : > { %408 = vmatpush.bf16.xpose.msra.mxu2 %v399_v31  ;;  %656 = vmatpush.bf16.msrb.mxu3 %v2546_v50 }
 0x161   : > { %712 = vmatpush.bf16.msra.mxu3 %v2552_v1 }
 0x163   : > { %v458_v17 = vpop.permute.xlu1 %457 }
 0x164   : > { %1986 = vmatmul.msk.bf16.vlgmr.msra.gmra.mxu2 %vm394_vm1, %v2536_v36  ;;  %v463_v16 = vsel %vm394_vm1, %v458_v17, 0 }
 0x165   : > { %472 = vmatpush.bf16.xpose.msrb.mxu2 %v463_v16 }
 0x16d   : > { %628 = vmatpush.bf16.msra.mxu2 %v2541_v42 }
 0x174   : > { %1988 = vmatmul.msk.bf16.vlgmr.msrb.gmra.mxu2 %vm394_vm1, %v2481_v47 }
 0x175   : > { %684 = vmatpush.bf16.msrb.mxu2 %v2549_v57 }
 0x1b9   : > { %v442_v2 = vpop.f32.mrf.mxu0 }
 0x1ba   : > { %v517_v3 = vsel %vm394_vm1, %v442_v2, -inf }
 0x1bb   : > { %518 = vmax.xlane.f32.xlu2 %v517_v3 }
 0x1c1   : > { %v444_v6 = vpop.f32.mrf.mxu0 }
 0x1c2   : > { %v520_v7 = vsel %vm394_vm1, %v444_v6, -inf }
 0x1c3   : > { %521 = vmax.xlane.f32.xlu0 %v520_v7 }
 0x1c9   : > { %v792_v10 = vpop.f32.mrf.mxu0 }
 0x1ca   : > { %v833_v19 = vsel %vm394_vm1, %v792_v10, -inf }
 0x1d1   : > { %v2562_v20 = vpop.f32.mrf.mxu0 }
 0x1d2   : > { %v836_v22 = vsel %vm394_vm1, %v2562_v20, -inf }
 0x1d9   : > { %v816_v8 = vpop.f32.mrf.mxu1 }
 0x1da   : > { %v839_v9 = vsel %vm394_vm1, %v816_v8, -inf }
 0x1db   : > { %840 = vmax.xlane.f32.xlu0 %v839_v9 }
 0x1df   : > { %v506_v11 = vpop.f32.mrf.mxu3 }
 0x1e0   : > { %v529_v12 = vsel %vm394_vm1, %v506_v11, -inf }
 0x1e1   : > { %530 = vmax.xlane.f32.xlu1 %v529_v12  ;;  %v818_v13 = vpop.f32.mrf.mxu1 }
 0x1e2   : > { %v842_v15 = vsel %vm394_vm1, %v818_v13, -inf }
 0x1e3   : > { %834 = vmax.xlane.f32.xlu0 %v833_v19 }
 0x1e7   : > { %v508_v14 = vpop.f32.mrf.mxu3  ;;  %v2594_v62 = vpop.f32.mrf.mxu2 }
 0x1e8   : > { %v532_v18 = vsel %vm394_vm1, %v508_v14, -inf  ;;  %v511_v12 = vsel %vm394_vm1, %v2594_v62, -inf }
 0x1e9   : > { %843 = vmax.xlane.f32.xlu1 %v842_v15  ;;  %533 = vmax.xlane.f32.xlu2 %v532_v18 }
 0x1f1   : > { %837 = vmax.xlane.f32.xlu1 %v836_v22 }
 0x201   : > { %751 = vrot.lane.b32.xlu2 %v2455_v24, %s2318_s6 }
 0x22e   : > { %v519_v23 = vpop.xlane.xlu2 %518 }
 0x22f   : > { %v537_v25 = vsub.f32 %v442_v2, %v519_v23  ;;  %v2604_v2 = vpop.f32.mrf.mxu2 }
 0x230   : > { %v514_v3 = vsel %vm394_vm1, %v2604_v2, -inf }
 0x231   : > { %v547_v26 = vmul.f32 1.442695, %v537_v25 }
 0x233   : > { %2125 = vpow2.f32 %v547_v26 }
 0x236   : > { %v522_v27 = vpop.xlane.xlu0 %521 }
 0x237   : > { %v538_v28 = vsub.f32 %v444_v6, %v522_v27 }
 0x239   : > { %v2568_v29 = vpop.eup %2125  ;;  %v549_v30 = vmul.f32 1.442695, %v538_v28 }
 0x23a   : > { %v565_v31 = vsel %vm394_vm1, %v2568_v29, 0.0 }
 0x23b   : > { %2127 = vpow2.f32 %v549_v30  ;;  %566 = vadd.xlane.f32.xlu2 %v565_v31 }
 0x241   : > { %v2572_v32 = vpop.eup %2127 }
 0x242   : > { %v568_v33 = vsel %vm394_vm1, %v2572_v32, 0.0 }
 0x243   : > { %569 = vadd.xlane.f32.xlu0 %v568_v33 }
 0x24e   : > { %v841_v35 = vpop.xlane.xlu0 %840 }
 0x24f   : > { %v851_v17 = vsub.f32 %v816_v8, %v841_v35 }
 0x251   : > { %v865_v16 = vmul.f32 1.442695, %v851_v17 }
 0x253   : > { %2129 = vpow2.f32 %v865_v16 }
 0x254   : > { %v531_v37 = vpop.xlane.xlu1 %530 }
 0x255   : > { %v541_v38 = vsub.f32 %v506_v11, %v531_v37 }
 0x256   : > { %v835_v58 = vpop.xlane.xlu0 %834 }
 0x257   : > { %v555_v39 = vmul.f32 1.442695, %v541_v38  ;;  %749 = vrot.lane.b32.xlu0 %v2523_v21, %s2319_s28  ;;  %v849_v59 = vsub.f32 %v792_v10, %v835_v58 }
 0x259   : > { %v2578_v40 = vpop.eup %2129  ;;  %2131 = vpow2.f32 %v555_v39  ;;  %v861_v60 = vmul.f32 1.442695, %v849_v59 }
 0x25a   : > { %v887_v41 = vsel %vm394_vm1, %v2578_v40, 0.0 }
 0x25b   : > { %888 = vadd.xlane.f32.xlu1 %v887_v41 }
 0x25c   : > { %v844_v43 = vpop.xlane.xlu1 %843  ;;  %v534_v44 = vpop.xlane.xlu2 %533 }
 0x25d   : > { %v852_v45 = vsub.f32 %v818_v13, %v844_v43  ;;  %v542_v46 = vsub.f32 %v508_v14, %v534_v44 }
 0x25f   : > { %v2582_v48 = vpop.eup %2131  ;;  %v867_v49 = vmul.f32 1.442695, %v852_v45  ;;  %v557_v51 = vmul.f32 1.442695, %v542_v46 }
 0x260   : > { %v577_v52 = vsel %vm394_vm1, %v2582_v48, 0.0 }
 0x261   : > { %2133 = vpow2.f32 %v867_v49 }
 0x262   : > { %2135 = vpow2.f32 %v557_v51 }
 0x263   : > { %578 = vadd.xlane.f32.xlu1 %v577_v52  ;;  %2137 = vpow2.f32 %v861_v60 }
 0x264   : > { %v838_v6 = vpop.xlane.xlu1 %837  ;;  %v752_v9 = vpop.permute.xlu2 %751 }
 0x265   : > { %v850_v7 = vsub.f32 %v2562_v20, %v838_v6  ;;  %v757_v28 = vsel %vm394_vm1, %v752_v9, 0 }
 0x267   : > { %v2586_v53 = vpop.eup %2133  ;;  %v863_v8 = vmul.f32 1.442695, %v850_v7 }
 0x268   : > { %v2588_v54 = vpop.eup %2135  ;;  %v890_v56 = vsel %vm394_vm1, %v2586_v53, 0.0 }
 0x269   : > { %v580_v55 = vsel %vm394_vm1, %v2588_v54, 0.0  ;;  %v2596_v63 = vpop.eup %2137  ;;  %2139 = vpow2.f32 %v863_v8 }
 0x26a   : > { %581 = vadd.xlane.f32.xlu2 %v580_v55  ;;  %v881_v0 = vsel %vm394_vm1, %v2596_v63, 0.0 }
 0x26b   : > { %891 = vadd.xlane.f32.xlu1 %v890_v56 }
 0x26f   : > { %v2613_v10 = vpop.eup %2139 }
 0x270   : > { %v884_v11 = vsel %vm394_vm1, %v2613_v10, 0.0 }
 0x281   : > { %882 = vadd.xlane.f32.xlu0 %v881_v0 }
 0x282   : > { %997 = vrot.lane.b32.xlu2 %v2552_v1, %s2319_s28 }
 0x284   : > { %1143 = vrot.lane.b32.xlu1 %v2455_v24, %s2320_s5 }
 0x289   : > { %515 = vmax.xlane.f32.xlu0 %v514_v3 }
 0x29d   : > { %1191 = vrot.lane.b32.xlu0 %v2493_v61, %s2320_s5 }
 0x2a5   : > { %1119 = vrot.lane.b32.xlu0 %v2503_v4, %s2320_s5 }
 0x2ab   : > { %885 = vadd.xlane.f32.xlu2 %v884_v11 }
 0x2ae   : > { %512 = vmax.xlane.f32.xlu1 %v511_v12  ;;  %v567_v19 = vpop.xlane.xlu2 %566 }
 0x2af   : > { %2141 = vrcp.f32 %v567_v19 }
 0x2b5   : > { %v2142_v14 = vpop.eup %2141 }
 0x2b6   : > { %v570_v13 = vpop.xlane.xlu0 %569  ;;  %v593_v15 = vmul.f32 %v2142_v14, %v2568_v29  ;;  %v2627_v29 = vpop.f32.mrf.mxu2 }
 0x2b7   : > { %2143 = vrcp.f32 %v570_v13  ;;  %v523_v31 = vsel %vm394_vm1, %v2627_v29, -inf }
 0x2b8   : > { %v601_v20 = vpack.c.bf16 %v593_v15, %v593_v15 }
 0x2ba   : > { %v637_v25 = vunpack.c.l.b16 %v601_v20 }
 0x2bd   : > { %v2144_v18 = vpop.eup %2143 }
 0x2be   : > { %v594_v22 = vmul.f32 %v2144_v18, %v2572_v32  ;;  %v2646_v6 = vpop.f32.mrf.mxu2 }
 0x2c0   : > { %v602_v23 = vpack.c.bf16 %v594_v22, %v594_v22 }
 0x2c2   : > { %v638_v26 = vunpack.c.l.b16 %v602_v23 }
 0x2c3   : > { %1141 = vrot.lane.b32.xlu2 %v2523_v21, %s2321_s9 }
 0x2c4   : > { %v639_v27 = vpack.c.b16 %v638_v26, %v637_v25 }
 0x2c6   : > { %1991 = vmatmul.msk.bf16.vlgmr.msrb.gmra.mxu3 %vm394_vm1, %v639_v27 }
 0x2c7   : > { %766 = vmatpush.bf16.xpose.msrb.mxu3 %v757_v28  ;;  %972 = vrot.lane.b32.xlu1 %v2549_v57, %s2319_s28 }
 0x2cb   : > { %1189 = vrot.lane.b32.xlu2 %v2505_v5, %s2321_s9 }
 0x2ce   : > { %v889_v30 = vpop.xlane.xlu1 %888 }
 0x2cf   : > { %524 = vmax.xlane.f32.xlu0 %v523_v31  ;;  %1167 = vrot.lane.b32.xlu1 %v2459_v34, %s2320_s5  ;;  %s2074_s5 = sshll.u32 %s2372_s19, 6 }
 0x2d3   : > { %1117 = vrot.lane.b32.xlu2 %v2536_v36, %s2321_s9 }
 0x2d6   : > { %v579_v32 = vpop.xlane.xlu1 %578 }
 0x2d7   : > { %1165 = vrot.lane.b32.xlu1 %v2481_v47, %s2321_s9  ;;  %2145 = vrcp.f32 %v579_v32 }
 0x2d8   : > { %2147 = vrcp.f32 %v889_v30 }
 0x2dd   : > { %v582_v33 = vpop.xlane.xlu2 %581  ;;  %v2146_v35 = vpop.eup %2145 }
 0x2de   : > { %2149 = vrcp.f32 %v582_v33  ;;  %v892_v17 = vpop.xlane.xlu1 %891  ;;  %v2148_v16 = vpop.eup %2147  ;;  %v597_v37 = vmul.f32 %v2146_v35, %v2582_v48 }
 0x2df   : > { %2151 = vrcp.f32 %v892_v17  ;;  %v907_v38 = vmul.f32 %v2148_v16, %v2578_v40  ;;  %v750_v48 = vpop.permute.xlu0 %749 }
 0x2e0   : > { %v605_v43 = vpack.c.bf16 %v597_v37, %v597_v37 }
 0x2e1   : > { %v915_v46 = vpack.c.bf16 %v907_v38, %v907_v38 }
 0x2e2   : > { %v693_v55 = vunpack.c.l.b16 %v605_v43 }
 0x2e3   : > { %v994_v58 = vunpack.c.l.b16 %v915_v46 }
 0x2e4   : > { %v2150_v39 = vpop.eup %2149 }
 0x2e5   : > { %v2152_v41 = vpop.eup %2151  ;;  %v598_v44 = vmul.f32 %v2150_v39, %v2588_v54  ;;  %v998_v45 = vpop.permute.xlu2 %997 }
 0x2e6   : > { %v908_v49 = vmul.f32 %v2152_v41, %v2586_v53  ;;  %1010 = vmatpush.bf16.msra.mxu1 %v998_v45  ;;  %v526_v53 = vsel %vm394_vm1, %v2646_v6, -inf }
 0x2e7   : > { %v606_v51 = vpack.c.bf16 %v598_v44, %v598_v44 }
 0x2e8   : > { %v916_v52 = vpack.c.bf16 %v908_v49, %v908_v49 }
 0x2e9   : > { %v694_v56 = vunpack.c.l.b16 %v606_v51 }
 0x2ea   : > { %v995_v59 = vunpack.c.l.b16 %v916_v52 }
 0x2eb   : > { %v695_v60 = vpack.c.b16 %v694_v56, %v693_v55 }
 0x2ec   : > { %v996_v0 = vpack.c.b16 %v995_v59, %v994_v58 }
 0x2ed   : > { %1993 = vmatmul.msk.bf16.vlgmr.msra.gmra.mxu3 %vm394_vm1, %v695_v60 }
 0x2ee   : > { %2001 = vmatmul.msk.bf16.vlgmr.msra.gmra.mxu1 %vm394_vm1, %v996_v0 }
 0x2f4   : > { %v883_v40 = vpop.xlane.xlu0 %882 }
 0x2f6   : > { %v1144_v54 = vpop.permute.xlu1 %1143 }
 0x2f7   : > { %v1149_v3 = vsel %vm394_vm1, %v1144_v54, 0 }
 0x2f8   : > { %1158 = vmatpush.bf16.xpose.msrb.mxu1 %v1149_v3 }
 0x2fc   : > { %527 = vmax.xlane.f32.xlu2 %v526_v53  ;;  %v516_v7 = vpop.xlane.xlu0 %515 }
 0x2fd   : > { %v536_v8 = vsub.f32 %v2604_v2, %v516_v7  ;;  %1995 = vmatmul.msk.bf16.vlgmr.msrb.gmra.mxu3 %vm394_vm1, %v750_v48 }
 0x2ff   : > { %v545_v9 = vmul.f32 1.442695, %v536_v8 }
 0x301   : > { %2153 = vpow2.f32 %v545_v9 }
 0x307   : > { %v2652_v11 = vpop.eup %2153 }
 0x308   : > { %v562_v12 = vsel %vm394_vm1, %v2652_v11, 0.0 }
 0x309   : > { %563 = vadd.xlane.f32.xlu0 %v562_v12 }
 0x30f   : > { %v1192_v19 = vpop.permute.xlu0 %1191 }
 0x310   : > { %v1197_v13 = vsel %vm394_vm1, %v1192_v19, 0 }
 0x311   : > { %1206 = vmatpush.bf16.xpose.msra.mxu1 %v1197_v13 }
 0x317   : > { %v1120_v32 = vpop.permute.xlu0 %1119 }
 0x318   : > { %v1125_v16 = vsel %vm394_vm1, %v1120_v32, 0 }
 0x31e   : > { %v886_v14 = vpop.xlane.xlu2 %885 }
 0x31f   : > { %2155 = vrcp.f32 %v886_v14 }
 0x321   : > { %v513_v15 = vpop.xlane.xlu1 %512 }
 0x322   : > { %v535_v18 = vsub.f32 %v2594_v62, %v513_v15 }
 0x324   : > { %v543_v20 = vmul.f32 1.442695, %v535_v18 }
 0x325   : > { %v2156_v22 = vpop.eup %2155 }
 0x326   : > { %2157 = vpow2.f32 %v543_v20  ;;  %v1142_v2 = vpop.permute.xlu2 %1141  ;;  %v906_v27 = vmul.f32 %v2156_v22, %v2613_v10 }
 0x327   : > { %2019 = vmatmul.msk.bf16.vlgmr.msrb.gmra.mxu1 %vm394_vm1, %v1142_v2  ;;  %2159 = vrcp.f32 %v883_v40 }
 0x328   : > { %v914_v62 = vpack.c.bf16 %v906_v27, %v906_v27 }
 0x32a   : > { %v970_v33 = vunpack.c.l.b16 %v914_v62 }
 0x32c   : > { %v2659_v23 = vpop.eup %2157 }
 0x32d   : > { %v559_v25 = vsel %vm394_vm1, %v2659_v23, 0.0  ;;  %v2160_v26 = vpop.eup %2159 }
 0x32e   : > { %560 = vadd.xlane.f32.xlu1 %v559_v25  ;;  %v905_v28 = vmul.f32 %v2160_v26, %v2596_v63  ;;  %v1190_v31 = vpop.permute.xlu2 %1189 }
 0x330   : > { %v913_v30 = vpack.c.bf16 %v905_v28, %v905_v28 }
 0x332   : > { %v969_v35 = vunpack.c.l.b16 %v913_v30 }
 0x334   : > { %v971_v37 = vpack.c.b16 %v970_v33, %v969_v35 }
 0x336   : > { %v1118_v43 = vpop.permute.xlu2 %1117 }
 0x337   : > { %2021 = vmatmul.msk.bf16.vlgmr.msra.gmra.mxu1 %vm394_vm1, %v1190_v31 }
 0x339   : > { %v973_v17 = vpop.permute.xlu1 %972 }
 0x33a   : > { %985 = vmatpush.bf16.msrb.mxu0 %v973_v17 }
 0x33d   : > { %2000 = vmatmul.msk.bf16.vlgmr.msrb.gmra.mxu0 %vm394_vm1, %v971_v37 }
 0x33e   : > { %1134 = vmatpush.bf16.xpose.msra.mxu0 %v1125_v16 }
 0x341   : > { %v1168_v38 = vpop.permute.xlu1 %1167 }
 0x342   : > { %v1173_v10 = vsel %vm394_vm1, %v1168_v38, 0  ;;  %v525_v63 = vpop.xlane.xlu0 %524 }
 0x343   : > { %v539_v39 = vsub.f32 %v2627_v29, %v525_v63 }
 0x345   : > { %v551_v41 = vmul.f32 1.442695, %v539_v39 }
 0x346   : > { %1182 = vmatpush.bf16.xpose.msrb.mxu0 %v1173_v10 }
 0x347   : > { %2161 = vpow2.f32 %v551_v41 }
 0x349   : > { %v1166_v46 = vpop.permute.xlu1 %1165  ;;  %v2676_v49 = vpop.f32.mrf.mxu3 }
 0x34d   : > { %v2670_v44 = vpop.eup %2161  ;;  %2018 = vmatmul.msk.bf16.vlgmr.msra.gmra.mxu0 %vm394_vm1, %v1118_v43 }
 0x34e   : > { %v571_v45 = vsel %vm394_vm1, %v2670_v44, 0.0 }
 0x34f   : > { %572 = vadd.xlane.f32.xlu2 %v571_v45 }
 0x351   : > { %v2678_v51 = vpop.f32.mrf.mxu3 }
 0x35d   : > { %2020 = vmatmul.msk.bf16.vlgmr.msrb.gmra.mxu0 %vm394_vm1, %v1166_v46 }
 0x36b   : > { %v2680_v29 = vpop.f32.mrf.mxu1 }
 0x36f   : > { %v528_v52 = vpop.xlane.xlu2 %527 }
 0x370   : > { %v540_v55 = vsub.f32 %v2646_v6, %v528_v52  ;;  %v2683_v56 = vpop.f32.mrf.mxu3 }
 0x372   : > { %v553_v58 = vmul.f32 1.442695, %v540_v55 }
 0x373   : > { %v2685_v59 = vpop.f32.mrf.mxu1 }
 0x374   : > { %2163 = vpow2.f32 %v553_v58  ;;  %v1020_v60 = vpack.c.bf16 %v2685_v59, %v2680_v29 }
 0x378   : > { %v2689_v48 = vpop.f32.mrf.mxu3 }
 0x379   : > { %v722_v0 = vpack.c.bf16 %v2689_v48, %v2683_v56 }
 0x37a   : > { %v2164_v40 = vpop.eup %2163 }
 0x37b   : > { %v574_v54 = vsel %vm394_vm1, %v2164_v40, 0.0 }
 0x37c   : > { %575 = vadd.xlane.f32.xlu0 %v574_v54  ;;  %v564_v8 = vpop.xlane.xlu0 %563 }
 0x37d   : > { %2165 = vrcp.f32 %v564_v8 }
 0x380   : > { %v768_v3 = vpop.f32.mrf.mxu3 }
 0x381   : > { %v827_v6 = vsel %vm394_vm1, %v768_v3, -inf }
 0x382   : > { %828 = vmax.xlane.f32.xlu2 %v827_v6 }
 0x383   : > { %v2166_v12 = vpop.eup %2165 }
 0x384   : > { %v592_v13 = vmul.f32 %v2166_v12, %v2652_v11 }
 0x386   : > { %v600_v18 = vpack.c.bf16 %v592_v13, %v592_v13 }
 0x388   : > { %v2695_v53 = vpop.f32.mrf.mxu3  ;;  %v610_v25 = vunpack.c.l.b16 %v600_v18 }
 0x389   : > { %v830_v7 = vsel %vm394_vm1, %v2695_v53, -inf }
 0x38a   : > { %831 = vmax.xlane.f32.xlu0 %v830_v7 }
 0x39a   : > { %727 = vrot.lane.b32.xlu2 %v2503_v4, %s2318_s6  ;;  %s2322_s6 = smov 16  }
 0x39e   : > { %725 = vrot.lane.b32.xlu0 %v2536_v36, %s2319_s28 }
 0x3a1   : > { %v561_v9 = vpop.xlane.xlu1 %560 }
 0x3a2   : > { %2167 = vrcp.f32 %v561_v9 }
 0x3a4   : > { %v2703_v19 = vpop.f32.mrf.mxu1 }
 0x3a5   : > { %v1219_v14 = vsel %vm394_vm1, %v2703_v19, -inf }
 0x3a6   : > { %1220 = vmax.xlane.f32.xlu1 %v1219_v14 }
 0x3a8   : > { %v2168_v15 = vpop.eup %2167 }
 0x3a9   : > { %v591_v20 = vmul.f32 %v2168_v15, %v2659_v23 }
 0x3ab   : > { %v599_v2 = vpack.c.bf16 %v591_v20, %v591_v20 }
 0x3ac   : > { %v1162_v22 = vpop.f32.mrf.mxu1 }
 0x3ad   : > { %v609_v26 = vunpack.c.l.b16 %v599_v2  ;;  %v1222_v27 = vsel %vm394_vm1, %v1162_v22, -inf }
 0x3ae   : > { %1223 = vmax.xlane.f32.xlu1 %v1222_v27 }
 0x3af   : > { %v611_v28 = vpack.c.b16 %v610_v25, %v609_v26 }
 0x3b1   : > { %1990 = vmatmul.msk.bf16.vlgmr.msra.gmra.mxu2 %vm394_vm1, %v611_v28 }
 0x3b4   : > { %v2711_v62 = vpop.f32.mrf.mxu1 }
 0x3b5   : > { %v1231_v32 = vsel %vm394_vm1, %v2711_v62, -inf }
 0x3ba   : > { %v2713_v11 = vpop.f32.mrf.mxu0 }
 0x3bc   : > { %v2715_v30 = vpop.f32.mrf.mxu1 }
 0x3bd   : > { %v1234_v31 = vsel %vm394_vm1, %v2715_v30, -inf }
 0x3be   : > { %1235 = vmax.xlane.f32.xlu1 %v1234_v31 }
 0x3c2   : > { %v2719_v23 = vpop.f32.mrf.mxu0  ;;  %v573_v39 = vpop.xlane.xlu2 %572 }
 0x3c3   : > { %v1019_v33 = vpack.c.bf16 %v2719_v23, %v2713_v11  ;;  %1232 = vmax.xlane.f32.xlu2 %v1231_v32  ;;  %2169 = vrcp.f32 %v573_v39 }
 0x3c9   : > { %v2170_v43 = vpop.eup %2169 }
 0x3ca   : > { %v2725_v35 = vpop.f32.mrf.mxu0  ;;  %v595_v45 = vmul.f32 %v2170_v43, %v2670_v44 }
 0x3cc   : > { %v603_v58 = vpack.c.bf16 %v595_v45, %v595_v45 }
 0x3ce   : > { %v665_v8 = vunpack.c.l.b16 %v603_v58 }
 0x3d2   : > { %v2727_v17 = vpop.f32.mrf.mxu0 }
 0x3d3   : > { %v1216_v16 = vsel %vm394_vm1, %v2727_v17, -inf }
 0x3d4   : > { %1217 = vmax.xlane.f32.xlu0 %v1216_v16 }
 0x3da   : > { %v2731_v37 = vpop.f32.mrf.mxu0 }
 0x3db   : > { %v1225_v38 = vsel %vm394_vm1, %v2731_v37, -inf }
 0x3dc   : > { %1226 = vmax.xlane.f32.xlu2 %v1225_v38 }
 0x3e2   : > { %v2735_v10 = vpop.f32.mrf.mxu0 }
 0x3e3   : > { %v1228_v63 = vsel %vm394_vm1, %v2735_v10, -inf }
 0x3e4   : > { %1229 = vmax.xlane.f32.xlu0 %v1228_v63 }
 0x3ef   : > { %v576_v41 = vpop.xlane.xlu0 %575 }
 0x3f0   : > { %2171 = vrcp.f32 %v576_v41 }
 0x3f5   : > { %v829_v46 = vpop.xlane.xlu2 %828 }
 0x3f6   : > { %v2172_v52 = vpop.eup %2171  ;;  %v847_v55 = vsub.f32 %v768_v3, %v829_v46  ;;  %v1213_v46 = vsel %vm394_vm1, %v2725_v35, -inf }
 0x3f7   : > { %v596_v54 = vmul.f32 %v2172_v52, %v2164_v40 }
 0x3f8   : > { %v857_v6 = vmul.f32 1.442695, %v847_v55 }
 0x3f9   : > { %v604_v7 = vpack.c.bf16 %v596_v54, %v596_v54 }
 0x3fa   : > { %2173 = vpow2.f32 %v857_v6 }
 0x3fb   : > { %v666_v9 = vunpack.c.l.b16 %v604_v7 }
 0x3fd   : > { %v667_v12 = vpack.c.b16 %v666_v9, %v665_v8  ;;  %v728_v13 = vpop.permute.xlu2 %727  ;;  %v832_v3 = vpop.xlane.xlu0 %831 }
 0x3fe   : > { %v733_v14 = vsel %vm394_vm1, %v728_v13, 0  ;;  %v848_v28 = vsub.f32 %v2695_v53, %v832_v3 }
 0x3ff   : > { %1992 = vmatmul.msk.bf16.vlgmr.msrb.gmra.mxu2 %vm394_vm1, %v667_v12 }
 0x400   : > { %v2742_v15 = vpop.eup %2173  ;;  %742 = vmatpush.bf16.xpose.msra.mxu2 %v733_v14  ;;  %v859_v16 = vmul.f32 1.442695, %v848_v28 }
 0x401   : > { %v875_v44 = vsel %vm394_vm1, %v2742_v15, 0.0 }
 0x402   : > { %876 = vadd.xlane.f32.xlu1 %v875_v44 }
 0x410   : > { %v726_v40 = vpop.permute.xlu0 %725 }
 0x411   : > { %1994 = vmatmul.msk.bf16.vlgmr.msra.gmra.mxu2 %vm394_vm1, %v726_v40 }
 0x419   : > { %v1221_v18 = vpop.xlane.xlu1 %1220 }
 0x41a   : > { %v1239_v20 = vsub.f32 %v2703_v19, %v1221_v18 }
 0x41b   : > { %947 = vrot.lane.b32.xlu1 %v2546_v50, %s2319_s28 }
 0x41c   : > { %v1249_v2 = vmul.f32 1.442695, %v1239_v20 }
 0x41e   : > { %2175 = vpow2.f32 %v1249_v2 }
 0x421   : > { %v1224_v25 = vpop.xlane.xlu1 %1223 }
 0x422   : > { %v1240_v26 = vsub.f32 %v1162_v22, %v1224_v25 }
 0x424   : > { %v2750_v27 = vpop.eup %2175  ;;  %v1251_v31 = vmul.f32 1.442695, %v1240_v26 }
 0x425   : > { %v1267_v32 = vsel %vm394_vm1, %v2750_v27, 0.0 }
 0x426   : > { %2177 = vpow2.f32 %v1251_v31  ;;  %1268 = vadd.xlane.f32.xlu2 %v1267_v32 }
 0x427   : > { %2179 = vpow2.f32 %v859_v16 }
 0x42c   : > { %v2755_v38 = vpop.eup %2177 }
 0x42d   : > { %v1270_v19 = vsel %vm394_vm1, %v2755_v38, 0.0  ;;  %v2759_v63 = vpop.eup %2179 }
 0x42e   : > { %1271 = vadd.xlane.f32.xlu0 %v1270_v19  ;;  %v878_v22 = vsel %vm394_vm1, %v2759_v63, 0.0 }
 0x431   : > { %v1236_v52 = vpop.xlane.xlu1 %1235 }
 0x432   : > { %v1244_v58 = vsub.f32 %v2715_v30, %v1236_v52 }
 0x434   : > { %v1259_v6 = vmul.f32 1.442695, %v1244_v58  ;;  %v2787_v14 = vpop.f32.mrf.mxu2 }
 0x436   : > { %879 = vadd.xlane.f32.xlu0 %v878_v22  ;;  %v1233_v53 = vpop.xlane.xlu2 %1232 }
 0x437   : > { %v1243_v39 = vsub.f32 %v2711_v62, %v1233_v53 }
 0x439   : > { %v1257_v41 = vmul.f32 1.442695, %v1243_v39 }
 0x43b   : > { %2181 = vpow2.f32 %v1257_v41 }
 0x43c   : > { %v2795_v40 = vpop.f32.mrf.mxu2 }
 0x43e   : > { %1339 = vrot.lane.b32.xlu2 %v2546_v50, %s2321_s9 }
 0x441   : > { %v2766_v43 = vpop.eup %2181 }
 0x442   : > { %v1279_v45 = vsel %vm394_vm1, %v2766_v43, 0.0 }
 0x443   : > { %1280 = vadd.xlane.f32.xlu0 %v1279_v45 }
 0x445   : > { %1214 = vmax.xlane.f32.xlu1 %v1213_v46 }
 0x446   : > { %1389 = vrot.lane.b32.xlu2 %v2552_v1, %s2321_s9 }
 0x447   : > { %v1218_v62 = vpop.xlane.xlu0 %1217 }
 0x448   : > { %v1238_v55 = vsub.f32 %v2727_v17, %v1218_v62 }
 0x44a   : > { %v1247_v54 = vmul.f32 1.442695, %v1238_v55 }
 0x44c   : > { %2183 = vpow2.f32 %v1247_v54 }
 0x44d   : > { %2185 = vpow2.f32 %v1259_v6 }
 0x44e   : > { %1314 = vrot.lane.b32.xlu2 %v2541_v42, %s2321_s9 }
 0x44f   : > { %v1227_v30 = vpop.xlane.xlu2 %1226 }
 0x450   : > { %v1241_v12 = vsub.f32 %v2731_v37, %v1227_v30 }
 0x452   : > { %v2778_v7 = vpop.eup %2183  ;;  %v1253_v13 = vmul.f32 1.442695, %v1241_v12 }
 0x453   : > { %v1264_v8 = vsel %vm394_vm1, %v2778_v7, 0.0  ;;  %v2782_v9 = vpop.eup %2185 }
 0x454   : > { %1265 = vadd.xlane.f32.xlu0 %v1264_v8  ;;  %v1282_v17 = vsel %vm394_vm1, %v2782_v9, 0.0  ;;  %2187 = vpow2.f32 %v1253_v13 }
 0x457   : > { %v1230_v20 = vpop.xlane.xlu0 %1229 }
 0x458   : > { %v1242_v2 = vsub.f32 %v2735_v10, %v1230_v20 }
 0x45a   : > { %v2791_v44 = vpop.eup %2187 }
 0x45b   : > { %v1273_v3 = vsel %vm394_vm1, %v2791_v44, 0.0 }
 0x45c   : > { %1283 = vadd.xlane.f32.xlu0 %v1282_v17 }
 0x470   : > { %1520 = vrot.lane.b32.xlu0 %v2459_v34, %s2322_s6  ;;  %v1255_v34 = vmul.f32 1.442695, %v1242_v2 }
 0x472   : > { %2189 = vpow2.f32 %v1255_v34 }
 0x475   : > { %v877_v37 = vpop.xlane.xlu1 %876 }
 0x477   : > { %1274 = vadd.xlane.f32.xlu2 %v1273_v3 }
 0x478   : > { %v2806_v31 = vpop.eup %2189 }
 0x479   : > { %v1276_v16 = vsel %vm394_vm1, %v2806_v31, 0.0 }
 0x482   : > { %v2797_v18 = vpop.f32.mrf.mxu2 }
 0x48a   : > { %v2800_v25 = vpop.f32.mrf.mxu2 }
 0x48b   : > { %v721_v26 = vpack.c.bf16 %v2800_v25, %v2797_v18 }
 0x48d   : > { %v948_v28 = vpop.permute.xlu1 %947 }
 0x48e   : > { %960 = vmatpush.bf16.msra.mxu3 %v948_v28 }
 0x48f   : > { %1542 = vrot.lane.b32.xlu2 %v2505_v5, %s2323_s10  ;;  %v2069_v5 = vld [vmem:[%s3110_s2] sm:$0xff] }
 0x492   : > { %1095 = vmatpush.bf16.msrb.mxu3 %v2069_v5 }
 0x494   : > { %v2815_v55 = vpop.f32.mrf.mxu2 }
 0x499   : > { %v1269_v32 = vpop.xlane.xlu2 %1268 }
 0x49a   : > { %1277 = vadd.xlane.f32.xlu0 %v1276_v16  ;;  %2191 = vrcp.f32 %v1269_v32 }
 0x49c   : > { %v746_v3 = vpop.f32.mrf.mxu2 }
 0x4a0   : > { %v2192_v22 = vpop.eup %2191 }
 0x4a1   : > { %v1272_v10 = vpop.xlane.xlu0 %1271  ;;  %v1340_v19 = vpop.permute.xlu2 %1339  ;;  %v1295_v53 = vmul.f32 %v2192_v22, %v2750_v27 }
 0x4a2   : > { %2193 = vrcp.f32 %v1272_v10  ;;  %1352 = vmatpush.bf16.msrb.mxu1 %v1340_v19  ;;  %v719_v10 = vpack.c.bf16 %v2795_v40, %v2787_v14 }
 0x4a3   : > { %2195 = vrcp.f32 %v877_v37  ;;  %v1303_v41 = vpack.c.bf16 %v1295_v53, %v1295_v53 }
 0x4a5   : > { %v1336_v27 = vunpack.c.l.b16 %v1303_v41 }
 0x4a8   : > { %v2194_v39 = vpop.eup %2193 }
 0x4a9   : > { %v1296_v45 = vmul.f32 %v2194_v39, %v2755_v38  ;;  %v880_v46 = vpop.xlane.xlu0 %879  ;;  %v1390_v52 = vpop.permute.xlu2 %1389  ;;  %v720_v39 = vpack.c.bf16 %v2678_v51, %v2676_v49 }
 0x4aa   : > { %v2196_v62 = vpop.eup %2195  ;;  %2197 = vrcp.f32 %v880_v46  ;;  %1402 = vmatpush.bf16.msra.mxu1 %v1390_v52 }
 0x4ab   : > { %v1304_v58 = vpack.c.bf16 %v1296_v45, %v1296_v45  ;;  %v903_v54 = vmul.f32 %v2196_v62, %v2742_v15  ;;  %v824_v15 = vsel %vm394_vm1, %v746_v3, -inf }
 0x4ad   : > { %v1337_v6 = vunpack.c.l.b16 %v1304_v58  ;;  %v911_v30 = vpack.c.bf16 %v903_v54, %v903_v54 }
 0x4ae   : > { %1494 = vrot.lane.b32.xlu0 %v2523_v21, %s2323_s10 }
 0x4af   : > { %v1338_v8 = vpack.c.b16 %v1337_v6, %v1336_v27  ;;  %v944_v20 = vunpack.c.l.b16 %v911_v30 }
 0x4b0   : > { %v2198_v17 = vpop.eup %2197 }
 0x4b1   : > { %v904_v38 = vmul.f32 %v2198_v17, %v2759_v63  ;;  %2023 = vmatmul.msk.bf16.vlgmr.msrb.gmra.mxu1 %vm394_vm1, %v1338_v8  ;;  %v1315_v12 = vpop.permute.xlu2 %1314 }
 0x4b2   : > { %1327 = vmatpush.bf16.msra.mxu0 %v1315_v12 }
 0x4b3   : > { %v912_v13 = vpack.c.bf16 %v904_v38, %v904_v38 }
 0x4b5   : > { %v945_v37 = vunpack.c.l.b16 %v912_v13 }
 0x4b6   : > { %v1281_v63 = vpop.xlane.xlu0 %1280 }
 0x4b7   : > { %v946_v2 = vpack.c.b16 %v945_v37, %v944_v20 }
 0x4b8   : > { %v1215_v34 = vpop.xlane.xlu1 %1214  ;;  %825 = vmax.xlane.f32.xlu2 %v824_v15 }
 0x4b9   : > { %v1237_v21 = vsub.f32 %v2725_v35, %v1215_v34  ;;  %1999 = vmatmul.msk.bf16.vlgmr.msra.gmra.mxu3 %vm394_vm1, %v946_v2 }
 0x4bb   : > { %v1245_v28 = vmul.f32 1.442695, %v1237_v21 }
 0x4bd   : > { %2199 = vpow2.f32 %v1245_v28 }
 0x4be   : > { %2201 = vrcp.f32 %v1281_v63 }
 0x4c3   : > { %v2200_v32 = vpop.eup %2199 }
 0x4c4   : > { %v1261_v16 = vsel %vm394_vm1, %v2200_v32, 0.0  ;;  %v2202_v53 = vpop.eup %2201 }
 0x4c5   : > { %1262 = vadd.xlane.f32.xlu1 %v1261_v16  ;;  %v1299_v35 = vmul.f32 %v2202_v53, %v2766_v43 }
 0x4c7   : > { %v1266_v19 = vpop.xlane.xlu0 %1265  ;;  %v1307_v41 = vpack.c.bf16 %v1299_v35, %v1299_v35 }
 0x4c9   : > { %2014 = vmatmul.msk.bf16.vlgmr.msrb.gmra.mxu3 %vm394_vm1, %v719_v10  ;;  %v1386_v14 = vunpack.c.l.b16 %v1307_v41 }
 0x4cf   : > { %v1284_v22 = vpop.xlane.xlu0 %1283 }
 0x4d0   : > { %2203 = vrcp.f32 %v1284_v22 }
 0x4d6   : > { %v2204_v5 = vpop.eup %2203 }
 0x4d7   : > { %v1300_v45 = vmul.f32 %v2204_v5, %v2782_v9 }
 0x4d9   : > { %v1308_v46 = vpack.c.bf16 %v1300_v45, %v1300_v45  ;;  %2015 = vmatmul.msk.bf16.gmra.mxu3 %vm394_vm1, %v720_v39 }
 0x4db   : > { %v1387_v40 = vunpack.c.l.b16 %v1308_v46 }
 0x4dd   : > { %v1388_v52 = vpack.c.b16 %v1387_v40, %v1386_v14 }
 0x4de   : > { %1472 = vrot.lane.b32.xlu1 %v2503_v4, %s2322_s6 }
 0x4df   : > { %2025 = vmatmul.msk.bf16.vlgmr.msra.gmra.mxu1 %vm394_vm1, %v1388_v52 }
 0x4e2   : > { %v1521_v62 = vpop.permute.xlu0 %1520 }
 0x4e3   : > { %v1526_v43 = vsel %vm394_vm1, %v1521_v62, 0 }
 0x4e4   : > { %1535 = vmatpush.bf16.xpose.msrb.mxu1 %v1526_v43 }
 0x4e6   : > { %1470 = vrot.lane.b32.xlu1 %v2536_v36, %s2323_s10 }
 0x4e9   : > { %2016 = vmatmul.msk.bf16.gmra.mxu3 %vm394_vm1, %v721_v26 }
 0x4ea   : > { %v1275_v4 = vpop.xlane.xlu2 %1274 }
 0x4ee   : > { %1518 = vrot.lane.b32.xlu1 %v2481_v47, %s2323_s10 }
 0x4f2   : > { %v1543_v36 = vpop.permute.xlu2 %1542 }
 0x4f6   : > { %1544 = vrot.lane.b32.xlu1 %v2493_v61, %s2322_s6  ;;  %v821_v61 = vsel %vm394_vm1, %v2815_v55, -inf }
 0x4f9   : > { %2017 = vmatmul.msk.bf16.gmra.mxu3 %vm394_vm1, %v722_v0 }
 0x4fe   : > { %1364 = vrot.lane.b32.xlu1 %v2549_v57, %s2321_s9 }
 0x506   : > { %1496 = vrot.lane.b32.xlu1 %v2455_v24, %s2322_s6 }
 0x50d   : > { %v1278_v37 = vpop.xlane.xlu0 %1277 }
 0x52b   : > { %v826_v49 = vpop.xlane.xlu2 %825 }
 0x52c   : > { %v846_v51 = vsub.f32 %v746_v3, %v826_v49 }
 0x52e   : > { %v855_v9 = vmul.f32 1.442695, %v846_v51  ;;  %v2856_v47 = vpop.f32.mrf.mxu1 }
 0x530   : > { %2205 = vpow2.f32 %v855_v9  ;;  %822 = vmax.xlane.f32.xlu1 %v821_v61 }
 0x531   : > { %2207 = vrcp.f32 %v1266_v19 }
 0x536   : > { %v2860_v56 = vpop.eup %2205  ;;  %v2862_v48 = vpop.f32.mrf.mxu1 }
 0x537   : > { %v1410_v24 = vpack.c.bf16 %v2862_v48, %v2856_v47  ;;  %v872_v0 = vsel %vm394_vm1, %v2860_v56, 0.0  ;;  %v2208_v25 = vpop.eup %2207 }
 0x538   : > { %v1263_v18 = vpop.xlane.xlu1 %1262  ;;  %873 = vadd.xlane.f32.xlu1 %v872_v0  ;;  %v1294_v26 = vmul.f32 %v2208_v25, %v2778_v7 }
 0x539   : > { %2209 = vrcp.f32 %v1263_v18 }
 0x53a   : > { %v1302_v27 = vpack.c.bf16 %v1294_v26, %v1294_v26  ;;  %2211 = vrcp.f32 %v1278_v37 }
 0x53b   : > { %2213 = vrcp.f32 %v1275_v4 }
 0x53c   : > { %v2869_v58 = vpop.f32.mrf.mxu3  ;;  %v1312_v17 = vunpack.c.l.b16 %v1302_v27 }
 0x53f   : > { %v2210_v54 = vpop.eup %2209 }
 0x540   : > { %v1293_v6 = vmul.f32 %v2210_v54, %v2200_v32  ;;  %v2212_v15 = vpop.eup %2211 }
 0x541   : > { %v2214_v34 = vpop.eup %2213  ;;  %v1298_v21 = vmul.f32 %v2212_v15, %v2806_v31 }
 0x542   : > { %v1301_v8 = vpack.c.bf16 %v1293_v6, %v1293_v6  ;;  %v1297_v28 = vmul.f32 %v2214_v34, %v2791_v44  ;;  %v1495_v44 = vpop.permute.xlu0 %1494 }
 0x543   : > { %v1306_v16 = vpack.c.bf16 %v1298_v21, %v1298_v21 }
 0x544   : > { %v1311_v30 = vunpack.c.l.b16 %v1301_v8  ;;  %v2871_v38 = vpop.f32.mrf.mxu3  ;;  %v1305_v10 = vpack.c.bf16 %v1297_v28, %v1297_v28 }
 0x545   : > { %v1018_v12 = vpack.c.bf16 %v2871_v38, %v2869_v58  ;;  %v1362_v19 = vunpack.c.l.b16 %v1306_v16 }
 0x546   : > { %v1313_v13 = vpack.c.b16 %v1312_v17, %v1311_v30  ;;  %v1361_v22 = vunpack.c.l.b16 %v1305_v10 }
 0x548   : > { %2022 = vmatmul.msk.bf16.vlgmr.msra.gmra.mxu0 %vm394_vm1, %v1313_v13  ;;  %v1363_v35 = vpack.c.b16 %v1362_v19, %v1361_v22 }
 0x54c   : > { %v2888_v39 = vpop.f32.mrf.mxu3 }
 0x550   : > { %v1473_v3 = vpop.permute.xlu1 %1472 }
 0x551   : > { %v1478_v20 = vsel %vm394_vm1, %v1473_v3, 0  ;;  %922 = vrot.lane.b32.xlu1 %v2541_v42, %s2319_s28  ;;  %s191_s28 = sand.u32 1, %s2307_s16  }
 0x552   : > { %1487 = vmatpush.bf16.xpose.msra.mxu3 %v1478_v20  ;;  %s1926_s29 = sshll.u32 %s191_s28, 6  ;;  %s1844_s19 = scalar_lea.sflag [#allocation3], %s191_s28 }
 0x553   : > { %s3050_s8 = scalar_lea.vmem [#allocation2], %s1926_s29 }
 0x554   : > { %v2890_v41 = vpop.f32.mrf.mxu3  ;;  %s1857_s11 = sshll.u32 %s3050_s8, 4  ;;  %s1858_s11 = int_to_ptr.vmem [resolvable:$true] %s1857_s11 }
 0x558   : > { %v1471_v7 = vpop.permute.xlu1 %1470 }
 0x559   : > { %2034 = vmatmul.msk.bf16.vlgmr.msra.gmra.mxu3 %vm394_vm1, %v1471_v7 }
 0x55c   : > { %v2893_v40 = vpop.f32.mrf.mxu3 }
 0x560   : > { %v1519_v2 = vpop.permute.xlu1 %1518 }
 0x561   : > { %2036 = vmatmul.msk.bf16.vlgmr.msrb.gmra.mxu1 %vm394_vm1, %v1519_v2 }
 0x564   : > { %v2896_v43 = vpop.f32.mrf.mxu3 }
 0x568   : > { %v1545_v63 = vpop.permute.xlu1 %1544 }
 0x569   : > { %v1550_v32 = vsel %vm394_vm1, %v1545_v63, 0 }
 0x56a   : > { %1559 = vmatpush.bf16.xpose.msrb.mxu3 %v1550_v32 }
 0x570   : > { %v1365_v53 = vpop.permute.xlu1 %1364 }
 0x571   : > { %1377 = vmatpush.bf16.msrb.mxu0 %v1365_v53  ;;  %2037 = vmatmul.msk.bf16.vlgmr.msrb.gmra.mxu3 %vm394_vm1, %v1543_v36  ;;  %v2898_v36 = vpop.f32.mrf.mxu3 }
 0x574   : > { %2024 = vmatmul.msk.bf16.vlgmr.msrb.gmra.mxu0 %vm394_vm1, %v1363_v35 }
 0x578   : > { %v1497_v5 = vpop.permute.xlu1 %1496 }
 0x579   : > { %v1502_v31 = vsel %vm394_vm1, %v1497_v5, 0  ;;  %v2902_v9 = vpop.f32.mrf.mxu3 }
 0x57a   : > { %1511 = vmatpush.bf16.xpose.msra.mxu0 %v1502_v31 }
 0x581   : > { %v2910_v18 = vpop.f32.mrf.mxu3 }
 0x584   : > { %2035 = vmatmul.msk.bf16.vlgmr.msra.gmra.mxu0 %vm394_vm1, %v1495_v44 }
 0x589   : > { %v2914_v26 = vpop.f32.mrf.mxu3 }
 0x5a3   : > { %v823_v45 = vpop.xlane.xlu1 %822 }
 0x5a4   : > { %v845_v46 = vsub.f32 %v2815_v55, %v823_v45  ;;  %v2904_v55 = vpop.f32.mrf.mxu1 }
 0x5a6   : > { %v853_v14 = vmul.f32 1.442695, %v845_v46 }
 0x5a8   : > { %2215 = vpow2.f32 %v853_v14 }
 0x5ab   : > { %v874_v4 = vpop.xlane.xlu1 %873 }
 0x5ac   : > { %v2912_v25 = vpop.f32.mrf.mxu1  ;;  %2217 = vrcp.f32 %v874_v4 }
 0x5ae   : > { %v2216_v52 = vpop.eup %2215 }
 0x5af   : > { %v869_v62 = vsel %vm394_vm1, %v2216_v52, 0.0 }
 0x5b0   : > { %870 = vadd.xlane.f32.xlu0 %v869_v62 }
 0x5b2   : > { %v2218_v19 = vpop.eup %2217 }
 0x5b3   : > { %v902_v22 = vmul.f32 %v2218_v19, %v2860_v56 }
 0x5b5   : > { %v910_v35 = vpack.c.bf16 %v902_v22, %v902_v22 }
 0x5b7   : > { %v920_v44 = vunpack.c.l.b16 %v910_v35 }
 0x5c3   : > { %v923_v49 = vpop.permute.xlu1 %922 }
 0x5c4   : > { %935 = vmatpush.bf16.msrb.mxu2 %v923_v49 }
 0x5c5   : > { %v2900_v51 = vpop.f32.mrf.mxu0 }
 0x5cd   : > { %v2906_v61 = vpop.f32.mrf.mxu0 }
 0x5ce   : > { %v1409_v0 = vpack.c.bf16 %v2906_v61, %v2900_v51 }
 0x5dc   : > { %v1489_v6 = vpop.f32.mrf.mxu3 }
 0x5dd   : > { %v1566_v32 = vsel %vm394_vm1, %v1489_v6, -inf }
 0x5de   : > { %v1537_v54 = vpop.f32.mrf.mxu1 }
 0x5df   : > { %v1578_v27 = vsel %vm394_vm1, %v1537_v54, -inf }
 0x5e0   : > { %1579 = vmax.xlane.f32.xlu2 %v1578_v27 }
 0x5e4   : > { %v1491_v30 = vpop.f32.mrf.mxu3 }
 0x5e5   : > { %v1569_v13 = vsel %vm394_vm1, %v1491_v30, -inf }
 0x5e6   : > { %v1539_v8 = vpop.f32.mrf.mxu1 }
 0x5e7   : > { %v1581_v17 = vsel %vm394_vm1, %v1539_v8, -inf }
 0x5e8   : > { %1582 = vmax.xlane.f32.xlu2 %v1581_v17 }
 0x5f0   : > { %1570 = vmax.xlane.f32.xlu2 %v1569_v13 }
 0x5f1   : > { %v2919_v3 = vpop.f32.mrf.mxu0 }
 0x5f4   : > { %v1561_v20 = vpop.f32.mrf.mxu3 }
 0x5f5   : > { %v1584_v16 = vsel %vm394_vm1, %v1561_v20, -inf }
 0x5f9   : > { %v2921_v7 = vpop.f32.mrf.mxu0 }
 0x5fa   : > { %v1411_v37 = vpack.c.bf16 %v2921_v7, %v2919_v3 }
 0x5fc   : > { %v2925_v2 = vpop.f32.mrf.mxu3 }
 0x5fd   : > { %v1587_v15 = vsel %vm394_vm1, %v2925_v2, -inf }
 0x5fe   : > { %1588 = vmax.xlane.f32.xlu2 %v1587_v15 }
 0x601   : > { %v2929_v34 = vpop.f32.mrf.mxu0 }
 0x602   : > { %v1572_v21 = vsel %vm394_vm1, %v2929_v34, -inf }
 0x603   : > { %1573 = vmax.xlane.f32.xlu1 %v1572_v21 }
 0x609   : > { %v1515_v28 = vpop.f32.mrf.mxu0 }
 0x60a   : > { %v1575_v63 = vsel %vm394_vm1, %v1515_v28, -inf }
 0x60b   : > { %1576 = vmax.xlane.f32.xlu0 %v1575_v63 }
 0x613   : > { %1567 = vmax.xlane.f32.xlu0 %v1566_v32 }
 0x61b   : > { %1585 = vmax.xlane.f32.xlu0 %v1584_v16 }
 0x623   : > { %v871_v10 = vpop.xlane.xlu0 %870 }
 0x624   : > { %2219 = vrcp.f32 %v871_v10 }
 0x62a   : > { %v2220_v53 = vpop.eup %2219 }
 0x62b   : > { %v901_v5 = vmul.f32 %v2220_v53, %v2216_v52 }
 0x62d   : > { %v909_v31 = vpack.c.bf16 %v901_v5, %v901_v5 }
 0x62f   : > { %v919_v45 = vunpack.c.l.b16 %v909_v31 }
 0x631   : > { %v921_v46 = vpack.c.b16 %v920_v44, %v919_v45 }
 0x633   : > { %1998 = vmatmul.msk.bf16.vlgmr.msrb.gmra.mxu2 %vm394_vm1, %v921_v46 }
 0x653   : > { %v1580_v14 = vpop.xlane.xlu2 %1579 }
 0x654   : > { %v1594_v62 = vsub.f32 %v1537_v54, %v1580_v14 }
 0x656   : > { %v1606_v49 = vmul.f32 1.442695, %v1594_v62 }
 0x658   : > { %2221 = vpow2.f32 %v1606_v49 }
 0x65b   : > { %v1583_v27 = vpop.xlane.xlu2 %1582 }
 0x65c   : > { %v1595_v4 = vsub.f32 %v1539_v8, %v1583_v27 }
 0x65e   : > { %v2938_v17 = vpop.eup %2221  ;;  %v1608_v13 = vmul.f32 1.442695, %v1595_v4 }
 0x65f   : > { %v1626_v56 = vsel %vm394_vm1, %v2938_v17, 0.0 }
 0x660   : > { %2223 = vpow2.f32 %v1608_v13  ;;  %1627 = vadd.xlane.f32.xlu2 %v1626_v56 }
 0x663   : > { %v1571_v52 = vpop.xlane.xlu2 %1570 }
 0x664   : > { %v1591_v15 = vsub.f32 %v1491_v30, %v1571_v52 }
 0x666   : > { %v2942_v21 = vpop.eup %2223  ;;  %v1600_v63 = vmul.f32 1.442695, %v1591_v15 }
 0x667   : > { %v1629_v54 = vsel %vm394_vm1, %v2942_v21, 0.0 }
 0x668   : > { %2225 = vpow2.f32 %v1600_v63  ;;  %1630 = vadd.xlane.f32.xlu0 %v1629_v54 }
 0x66e   : > { %v2946_v32 = vpop.eup %2225 }
 0x66f   : > { %v1617_v8 = vsel %vm394_vm1, %v2946_v32, 0.0 }
 0x670   : > { %1618 = vadd.xlane.f32.xlu0 %v1617_v8 }
 0x671   : > { %v1589_v14 = vpop.xlane.xlu2 %1588 }
 0x676   : > { %v1574_v56 = vpop.xlane.xlu1 %1573 }
 0x677   : > { %v1592_v15 = vsub.f32 %v2929_v34, %v1574_v56  ;;  %v2071_v34 = vld [vmem:[%s3110_s2 + $0x10] sm:$0xff] }
 0x679   : > { %v1602_v63 = vmul.f32 1.442695, %v1592_v15 }
 0x67e   : > { %v1577_v16 = vpop.xlane.xlu0 %1576 }
 0x67f   : > { %v1593_v5 = vsub.f32 %v1515_v28, %v1577_v16 }
 0x681   : > { %v1604_v45 = vmul.f32 1.442695, %v1593_v5 }
 0x684   : > { %1667 = vrot.lane.b32.xlu0 %v2541_v42, %s2323_s10 }
 0x686   : > { %v1568_v10 = vpop.xlane.xlu0 %1567 }
 0x687   : > { %v1590_v30 = vsub.f32 %v1489_v6, %v1568_v10  ;;  %v1597_v6 = vsub.f32 %v2925_v2, %v1589_v14 }
 0x689   : > { %v1598_v19 = vmul.f32 1.442695, %v1590_v30  ;;  %v1612_v62 = vmul.f32 1.442695, %v1597_v6 }
 0x68b   : > { %2227 = vpow2.f32 %v1598_v19 }
 0x68e   : > { %v1586_v22 = vpop.xlane.xlu0 %1585 }
 0x68f   : > { %v1596_v53 = vsub.f32 %v1561_v20, %v1586_v22  ;;  %v2070_v20 = vld [vmem:[%s3110_s2 + $0x8] sm:$0xff] }
 0x690   : > { %1048 = vmatpush.bf16.msra.mxu2 %v2070_v20 }
 0x691   : > { %v2952_v35 = vpop.eup %2227  ;;  %v1610_v31 = vmul.f32 1.442695, %v1596_v53 }
 0x692   : > { %v1614_v44 = vsel %vm394_vm1, %v2952_v35, 0.0 }
 0x693   : > { %2229 = vpow2.f32 %v1610_v31  ;;  %1615 = vadd.xlane.f32.xlu2 %v1614_v44 }
 0x694   : > { %2231 = vpow2.f32 %v1604_v45  ;;  %1440 = vmatpush.bf16.msrb.mxu2 %v2071_v34 }
 0x695   : > { %2233 = vpow2.f32 %v1612_v62  ;;  %v1412_v62 = vpack.c.bf16 %v2912_v25, %v2904_v55 }
 0x696   : > { %2235 = vpow2.f32 %v1602_v63 }
 0x699   : > { %v2956_v46 = vpop.eup %2229 }
 0x69a   : > { %v1632_v42 = vsel %vm394_vm1, %v2956_v46, 0.0  ;;  %v2964_v28 = vpop.eup %2231 }
 0x69b   : > { %1633 = vadd.xlane.f32.xlu1 %v1632_v42  ;;  %v1623_v49 = vsel %vm394_vm1, %v2964_v28, 0.0  ;;  %v2968_v27 = vpop.eup %2233 }
 0x69c   : > { %v1635_v2 = vsel %vm394_vm1, %v2968_v27, 0.0 }
 0x6a3   : > { %1624 = vadd.xlane.f32.xlu1 %v1623_v49 }
 0x6ab   : > { %1717 = vrot.lane.b32.xlu2 %v2549_v57, %s2323_s10  ;;  %v2980_v57 = vpop.eup %2235 }
 0x6ae   : > { %1636 = vadd.xlane.f32.xlu0 %v1635_v2 }
 0x6b6   : > { %v937_v4 = vpop.f32.mrf.mxu2 }
 0x6bc   : > { %1742 = vrot.lane.b32.xlu1 %v2552_v1, %s2323_s10  ;;  %v1620_v1 = vsel %vm394_vm1, %v2980_v57, 0.0 }
 0x6be   : > { %v939_v13 = vpop.f32.mrf.mxu2 }
 0x6bf   : > { %v1017_v52 = vpack.c.bf16 %v939_v13, %v937_v4 }
 0x6c1   : > { %2006 = vmatmul.msk.bf16.vlgmr.msra.gmra.mxu2 %vm394_vm1, %v1017_v52 }
 0x6c4   : > { %1692 = vrot.lane.b32.xlu1 %v2546_v50, %s2323_s10  ;;  %s1856_s10 = scalar_lea.hbm %s3112_s4, %s2074_s5 }
 0x6c5   : > { %s1859_s12 = sshll.u32 %s1856_s10, 4  ;;  %s1860_s12 = int_to_ptr.hbm [resolvable:$true] %s1859_s12 }
 0x6c6   : > { %s2267_s13 = sshra.s32 %s1860_s12, 4  ;;  %s2268_s13 = int_to_ptr.hbm [resolvable:$true] %s2267_s13 }
 0x6c7   : > { %s2269_s14 = scalar_lea.hbm %s2268_s13, 64  ;;  %p2274_p0 = scmp.lt.s32.totalorder %s2268_s13, %s3112_s4 }
 0x6c8   : > { %p2270_p11 = scmp.ne.s32.totalorder %s2268_s13, %s2269_s14  ;;  %p2275_p1 = scmp.lt.s32.totalorder %s2273_s23, %s2269_s14 }
 0x6ca   : > { %p2271_p12 = pnand %p2270_p11, %p2389_p5  ;;  %p2276_p2 = por %p2275_p1, %p2274_p0 }
 0x6cc   : > { %p2272_p13 = pneg %p2271_p12 }
 0x6ce   : > { %p2277_p3 = pnand %p2276_p2, %p2272_p13 }
 0x6d1   : > { %2007 = vmatmul.msk.bf16.gmra.mxu2 %vm394_vm1, %v1018_v12 }
 0x6d3   : > { %v1628_v38 = vpop.xlane.xlu2 %1627 }
 0x6d4   : > { %1621 = vadd.xlane.f32.xlu2 %v1620_v1 }
 0x6db   : > { %v1631_v50 = vpop.xlane.xlu0 %1630 }
 0x6dc   : > { %2237 = vrcp.f32 %v1631_v50 }
 0x6dd   : > { %2239 = vrcp.f32 %v1628_v38 }
 0x6e1   : > { %2008 = vmatmul.msk.bf16.gmra.mxu2 %vm394_vm1, %v1019_v33 }
 0x6e2   : > { %v2238_v12 = vpop.eup %2237 }
 0x6e3   : > { %v1619_v54 = vpop.xlane.xlu0 %1618  ;;  %v2240_v11 = vpop.eup %2239  ;;  %v1651_v23 = vmul.f32 %v2238_v12, %v2942_v21 }
 0x6e4   : > { %2241 = vrcp.f32 %v1619_v54  ;;  %v1650_v33 = vmul.f32 %v2240_v11, %v2938_v17 }
 0x6e6   : > { %v1658_v8 = vpack.c.bf16 %v1650_v33, %v1650_v33 }
 0x6e8   : > { %v1714_v19 = vunpack.c.l.b16 %v1658_v8 }
 0x6ea   : > { %v2242_v59 = vpop.eup %2241 }
 0x6eb   : > { %v1647_v16 = vmul.f32 %v2242_v59, %v2946_v32 }
 0x6ed   : > { %v1655_v22 = vpack.c.bf16 %v1647_v16, %v1647_v16 }
 0x6ef   : > { %v1665_v17 = vunpack.c.l.b16 %v1655_v22 }
 0x6f1   : > { %2009 = vmatmul.msk.bf16.gmra.mxu2 %vm394_vm1, %v1020_v60  ;;  %v1659_v60 = vpack.c.bf16 %v1651_v23, %v1651_v23 }
 0x6f3   : > { %v1715_v10 = vunpack.c.l.b16 %v1659_v60 }
 0x6f6   : > { %v1668_v58 = vpop.permute.xlu0 %1667 }
 0x6f7   : > { %1680 = vmatpush.bf16.msrb.mxu0 %v1668_v58 }
 0x701   : > { %2030 = vmatmul.msk.bf16.vlgmr.msrb.gmra.mxu2 %vm394_vm1, %v1409_v0  ;;  %v1716_v0 = vpack.c.b16 %v1715_v10, %v1714_v19 }
 0x706   : > { %v1616_v29 = vpop.xlane.xlu2 %1615 }
 0x707   : > { %2243 = vrcp.f32 %v1616_v29 }
 0x70d   : > { %v2244_v30 = vpop.eup %2243 }
 0x70e   : > { %v1646_v51 = vmul.f32 %v2244_v30, %v2952_v35  ;;  %v1718_v61 = vpop.permute.xlu2 %1717  ;;  %v1634_v5 = vpop.xlane.xlu1 %1633 }
 0x70f   : > { %1730 = vmatpush.bf16.msra.mxu3 %v1718_v61  ;;  %2245 = vrcp.f32 %v1634_v5 }
 0x710   : > { %v1654_v53 = vpack.c.bf16 %v1646_v51, %v1646_v51 }
 0x711   : > { %2031 = vmatmul.msk.bf16.gmra.mxu2 %vm394_vm1, %v1410_v24 }
 0x712   : > { %v1664_v21 = vunpack.c.l.b16 %v1654_v53  ;;  %2040 = vmatmul.msk.bf16.vlgmr.msra.gmra.mxu3 %vm394_vm1, %v1716_v0 }
 0x714   : > { %v1666_v32 = vpack.c.b16 %v1665_v17, %v1664_v21  ;;  %v2124_v21 = vld [vmem:[%s3111_s3] ss:$0 sm:$0xff] }
 0x715   : > { %v2246_v31 = vpop.eup %2245 }
 0x716   : > { %2038 = vmatmul.msk.bf16.vlgmr.msrb.gmra.mxu0 %vm394_vm1, %v1666_v32  ;;  %v1652_v47 = vmul.f32 %v2246_v31, %v2956_v46  ;;  %v1625_v48 = vpop.xlane.xlu1 %1624 }
 0x718   : > { %v1660_v44 = vpack.c.bf16 %v1652_v47, %v1652_v47 }
 0x71a   : > { %v1739_v42 = vunpack.c.l.b16 %v1660_v44 }
 0x721   : > { %2032 = vmatmul.msk.bf16.gmra.mxu2 %vm394_vm1, %v1411_v37  ;;  %v1637_v35 = vpop.xlane.xlu0 %1636 }
 0x722   : > { %2247 = vrcp.f32 %v1637_v35 }
 0x723   : > { %2249 = vrcp.f32 %v1625_v48 }
 0x728   : > { %v2248_v24 = vpop.eup %2247 }
 0x729   : > { %v1653_v45 = vmul.f32 %v2248_v24, %v2968_v27  ;;  %v2250_v49 = vpop.eup %2249 }
 0x72a   : > { %v1649_v27 = vmul.f32 %v2250_v49, %v2964_v28  ;;  %v2072_v28 = vld [vmem:[%s3110_s2 + $0x18] sm:$0xff] }
 0x72b   : > { %v1661_v14 = vpack.c.bf16 %v1653_v45, %v1653_v45  ;;  %2075 = vmatpush.bf16.msrb.mxu3 %v2072_v28 }
 0x72c   : > { %v1657_v13 = vpack.c.bf16 %v1649_v27, %v1649_v27 }
 0x72d   : > { %v1740_v6 = vunpack.c.l.b16 %v1661_v14 }
 0x72e   : > { %v1743_v20 = vpop.permute.xlu1 %1742  ;;  %v1690_v56 = vunpack.c.l.b16 %v1657_v13 }
 0x72f   : > { %v1741_v3 = vpack.c.b16 %v1740_v6, %v1739_v42  ;;  %1755 = vmatpush.bf16.msra.mxu0 %v1743_v20 }
 0x731   : > { %2033 = vmatmul.msk.bf16.gmra.mxu2 %vm394_vm1, %v1412_v62 }
 0x732   : > { %2041 = vmatmul.msk.bf16.vlgmr.msra.gmra.mxu0 %vm394_vm1, %v1741_v3 }
 0x736   : > { %v1693_v7 = vpop.permute.xlu1 %1692 }
 0x737   : > { %1705 = vmatpush.bf16.msra.mxu1 %v1693_v7 }
 0x73b   : > { %1793 = vmatpush.bf16.msrb.mxu1 %v2072_v28 }
 0x744   : > { %v1050_v37 = vpop.f32.mrf.mxu2 }
 0x745   : > { %v1098_v53 = vadd.f32 %v2888_v39, %v1050_v37 }
 0x747   : > { %v1622_v46 = vpop.xlane.xlu2 %1621 }
 0x748   : > { %2251 = vrcp.f32 %v1622_v46 }
 0x74c   : > { %v1052_v2 = vpop.f32.mrf.mxu2 }
 0x74d   : > { %v1100_v47 = vadd.f32 %v2890_v41, %v1052_v2 }
 0x74e   : > { %v2252_v4 = vpop.eup %2251 }
 0x74f   : > { %v1648_v55 = vmul.f32 %v2252_v4, %v2980_v57 }
 0x751   : > { %v1656_v25 = vpack.c.bf16 %v1648_v55, %v1648_v55 }
 0x753   : > { %v1689_v52 = vunpack.c.l.b16 %v1656_v25 }
 0x754   : > { %v1055_v15 = vpop.f32.mrf.mxu2 }
 0x755   : > { %v1691_v63 = vpack.c.b16 %v1690_v56, %v1689_v52  ;;  %v1103_v12 = vadd.f32 %v2893_v40, %v1055_v15 }
 0x757   : > { %2039 = vmatmul.msk.bf16.vlgmr.msra.gmra.mxu1 %vm394_vm1, %v1691_v63 }
 0x75c   : > { %v1057_v1 = vpop.f32.mrf.mxu2 }
 0x75d   : > { %v1105_v59 = vadd.f32 %v2896_v43, %v1057_v1 }
 0x764   : > { %v1060_v34 = vpop.f32.mrf.mxu2 }
 0x765   : > { %v1108_v48 = vadd.f32 %v2898_v36, %v1060_v34 }
 0x76c   : > { %v1062_v50 = vpop.f32.mrf.mxu2 }
 0x76d   : > { %v1110_v41 = vadd.f32 %v2902_v9, %v1062_v50 }
 0x774   : > { %v1065_v54 = vpop.f32.mrf.mxu2 }
 0x775   : > { %v1113_v49 = vadd.f32 %v2910_v18, %v1065_v54 }
 0x77c   : > { %v3029_v58 = vpop.f32.mrf.mxu2 }
 0x77d   : > { %v1115_v55 = vadd.f32 %v2914_v26, %v3029_v58 }
 0x784   : > { %v1442_v57 = vpop.f32.mrf.mxu2 }
 0x785   : > { %v1462_v17 = vadd.f32 %v1442_v57, %v1098_v53 }
 0x78c   : > { %v1444_v38 = vpop.f32.mrf.mxu2 }
 0x78d   : > { %v1463_v39 = vadd.f32 %v1444_v38, %v1100_v47 }
 0x793   : > { %v1682_v11 = vpop.f32.mrf.mxu0 }
 0x794   : > { %v1447_v23 = vpop.f32.mrf.mxu2 }
 0x795   : > { %v3032_v33 = vadd.f32 %v1447_v23, %v1103_v12  ;;  %v1732_v29 = vpop.f32.mrf.mxu3 }
 0x79b   : > { %v1684_v60 = vpop.f32.mrf.mxu0 }
 0x79c   : > { %v1762_v8 = vpack.c.bf16 %v1684_v60, %v1682_v11  ;;  %v1449_v16 = vpop.f32.mrf.mxu2 }
 0x79d   : > { %v3035_v10 = vadd.f32 %v1449_v16, %v1105_v59  ;;  %v1734_v30 = vpop.f32.mrf.mxu3 }
 0x79e   : > { %v1764_v19 = vpack.c.bf16 %v1734_v30, %v1732_v29  ;;  %2046 = vmatmul.msk.bf16.vlgmr.msrb.gmra.mxu1 %vm394_vm1, %v1762_v8 }
 0x7a0   : > { %2048 = vmatmul.msk.bf16.vlgmr.msrb.gmra.mxu3 %vm394_vm1, %v1764_v19 }
 0x7a4   : > { %v1452_v35 = vpop.f32.mrf.mxu2 }
 0x7a5   : > { %v1466_v24 = vadd.f32 %v1452_v35, %v1108_v48 }
 0x7ac   : > { %v1454_v62 = vpop.f32.mrf.mxu2 }
 0x7ad   : > { %v1467_v36 = vadd.f32 %v1454_v62, %v1110_v41 }
 0x7af   : > { %v1757_v40 = vpop.f32.mrf.mxu0 }
 0x7b4   : > { %v1457_v46 = vpop.f32.mrf.mxu2 }
 0x7b5   : > { %v1468_v27 = vadd.f32 %v1457_v46, %v1113_v49 }
 0x7b7   : > { %v1759_v22 = vpop.f32.mrf.mxu0 }
 0x7b8   : > { %v1765_v51 = vpack.c.bf16 %v1759_v22, %v1757_v40 }
 0x7ba   : > { %2049 = vmatmul.msk.bf16.gmra.mxu3 %vm394_vm1, %v1765_v51 }
 0x7bc   : > { %v1459_v13 = vpop.f32.mrf.mxu2 }
 0x7bd   : > { %v1469_v25 = vadd.f32 %v1459_v13, %v1115_v55 }
 0x7d4   : > { %v1707_v61 = vpop.f32.mrf.mxu1 }
 0x7dc   : > { %v1709_v43 = vpop.f32.mrf.mxu1 }
 0x7dd   : > { %v1763_v0 = vpack.c.bf16 %v1709_v43, %v1707_v61 }
 0x7df   : > { %2047 = vmatmul.msk.bf16.gmra.mxu1 %vm394_vm1, %v1763_v0 }
 0x81b   : > { %v1795_v32 = vpop.f32.mrf.mxu1 }
 0x81c   : > { %v1815_v5 = vadd.f32 %v1795_v32, %v1462_v17 }
 0x81e   : > { %v1827_v31 = vadd.f32 %v2124_v21, %v1815_v5 }
 0x820   : > { %1835 = vst.msk [vmem:[%s3050_s8] sm:$0xff] %vm279_vm0, %v1827_v31 }
 0x823   : > { %v1797_v44 = vpop.f32.mrf.mxu1  ;;  %v1805_v45 = vpop.f32.mrf.mxu3 }
 0x824   : > { %v1816_v14 = vadd.f32 %v1797_v44, %v1463_v39  ;;  %v1819_v42 = vadd.f32 %v1805_v45, %v1466_v24 }
 0x826   : > { %v1828_v6 = vadd.f32 %v2124_v21, %v1816_v14  ;;  %v1831_v20 = vadd.f32 %v2124_v21, %v1819_v42 }
 0x828   : > { %1836 = vst.msk [vmem:[%s3050_s8 + $0x8] sm:$0xff] %vm279_vm0, %v1828_v6 }
 0x829   : > { %1839 = vst.msk [vmem:[%s3050_s8 + $0x20] sm:$0xff] %vm279_vm0, %v1831_v20 }
 0x82b   : > { %v1807_v3 = vpop.f32.mrf.mxu3 }
 0x82c   : > { %v1820_v7 = vadd.f32 %v1807_v3, %v1467_v36 }
 0x82e   : > { %v1832_v37 = vadd.f32 %v2124_v21, %v1820_v7 }
 0x830   : > { %1840 = vst.msk [vmem:[%s3050_s8 + $0x28] sm:$0xff] %vm279_vm0, %v1832_v37 }
 0x83d   : > { %v1810_v2 = vpop.f32.mrf.mxu3 }
 0x83e   : > { %v1821_v9 = vadd.f32 %v1810_v2, %v1468_v27 }
 0x840   : > { %v1833_v4 = vadd.f32 %v2124_v21, %v1821_v9 }
 0x842   : > { %1841 = vst.msk [vmem:[%s3050_s8 + $0x30] sm:$0xff] %vm279_vm0, %v1833_v4 }
 0x845   : > { %v1812_v56 = vpop.f32.mrf.mxu3 }
 0x846   : > { %v1822_v52 = vadd.f32 %v1812_v56, %v1469_v25 }
 0x848   : > { %v1834_v15 = vadd.f32 %v2124_v21, %v1822_v52 }
 0x84a   : > { %1842 = vst.msk [vmem:[%s3050_s8 + $0x38] sm:$0xff] %vm279_vm0, %v1834_v15 }
 0x85c   : > { %v1800_v18 = vpop.f32.mrf.mxu1 }
 0x85d   : > { %v1817_v63 = vadd.f32 %v1800_v18, %v3032_v33 }
 0x85f   : > { %v1829_v1 = vadd.f32 %v2124_v21, %v1817_v63 }
 0x861   : > { %1837 = vst.msk [vmem:[%s3050_s8 + $0x10] sm:$0xff] %vm279_vm0, %v1829_v1 }
 0x864   : > { %v1802_v26 = vpop.f32.mrf.mxu1 }
 0x865   : > { %v1818_v34 = vadd.f32 %v1802_v26, %v3035_v10 }
 0x867   : > { %v1830_v50 = vadd.f32 %v2124_v21, %v1818_v34 }
 0x869   : > { %1838 = vst.msk [vmem:[%s3050_s8 + $0x18] sm:$0xff] %vm279_vm0, %v1830_v50 }
 0x86a   : > { %2280 = shalt.err (!%p2277_p3)
}
 0x86b   : > { %s2324_s28 = smov 128   ;;  %s2325_s30 = smov 8  }
 0x86c   : > { %2076 = dma.vmem_to_hbm [thread:$0]  (%p2389_p5), %s1858_s11, 1024, %s1860_s12, %s1844_s19, %s2324_s28, %s2324_s28, %s2325_s30  }
 0x86d PF: > { %p2082_p4 = scmp.ge.s32.totalorder %s2315_s18, 2  ;;  %s1874_s7 = sand.u32 1, %s2303_s15  }
 0x86e   : > { %s1875_s8 = scalar_lea.sflag [#allocation3], %s1874_s7 }
 0x86f   : > { %p2079_p7 = pnand %p2082_p4, %p2393_p6 }
 0x871   : > { %p2080_p8 = pneg %p2079_p7 }
 0x873   : > { %2298 = dma.done.wait (%p2080_p8), %s1875_s8, 1024  }
 0x874   : > { %2300 = vsyncadd (%p2080_p8), %s1875_s8, 4294966272  ;;  %p14_p9 = scmp.ge.s32.totalorder %s2376_s21, 4   ;;  %s3115_s15 = smov %s2307_s16 }
 0x875   : > { %s3116_s16 = smov %s2311_s17  ;;  %s3117_s17 = smov %s2387_s24 }
 0x876   : > { %s3118_s18 = smov %s2376_s21  ;;  %16 = sbr.rel (!%p14_p9) target bundleno = 3 (0x3), region = 71 }
 0x87b   :  { %1881 = vsyncpa [#allocation3], 1 }
 0x87c   :  { %1883 = vsyncpa [#allocation3 + $0x1], 1 }

</bundles_post_ra>
